<compile_context>
chip_gen: v5e
topology: v5e:2x2
jax: 0.10.0
libtpu: 0.0.40
codegen_flags: <defaults>
</compile_context>

<pallas_src>
import jax
import jax.numpy as jnp
from jax.experimental import pallas as pl
from jax.experimental.pallas import tpu as pltpu


def _round_up(n, m):
    return ((n + m - 1) // m) * m


def gru_block_kernel(gi_ref, len_ref, whh_ref, bhhn_ref, out_ref, hid_ref):
    """One grid step == TB GRU timesteps for one batch block.

    gi_ref  : (TB, BB, 3*Hp)  precomputed x@W_ih + b_ih (+ b_hh for r,z gates)
    len_ref : (BB, 1)         int32 sequence lengths
    whh_ref : (Hp, 3*Hp)      hidden->hidden weights, gates [r | z | n]
    bhhn_ref: (1, Hp)         n-gate hidden bias (kept separate: multiplied by r)
    out_ref : (TB, BB, Hp)    per-timestep outputs (zeros at padded steps)
    hid_ref : (BB, Hp)        resident output block; doubles as the hidden-state
                              carry across time blocks (accumulator pattern).
    """
    t_blk = pl.program_id(1)
    TB = out_ref.shape[0]
    Hp = whh_ref.shape[0]

    @pl.when(t_blk == 0)
    def _():
        # hidden=None in the torch module -> zero initial state.
        hid_ref[...] = jnp.zeros_like(hid_ref)

    lengths = len_ref[...]            # (BB, 1) int32
    w_hh = whh_ref[...]               # (Hp, 3*Hp)
    b_hh_n = bhhn_ref[...]            # (1, Hp)
    t0 = t_blk * TB

    def step(i, h_prev):
        gi = gi_ref[i]                                             # (BB, 3*Hp)
        gh = jnp.dot(h_prev, w_hh, preferred_element_type=jnp.float32)
        r = jax.nn.sigmoid(gi[:, 0 * Hp:1 * Hp] + gh[:, 0 * Hp:1 * Hp])
        z = jax.nn.sigmoid(gi[:, 1 * Hp:2 * Hp] + gh[:, 1 * Hp:2 * Hp])
        n = jnp.tanh(gi[:, 2 * Hp:3 * Hp] + r * (gh[:, 2 * Hp:3 * Hp] + b_hh_n))
        h_new = (1.0 - z) * n + z * h_prev
        # Packed-sequence semantics: timesteps t >= length[b] are never processed.
        valid = (t0 + i) < lengths                                 # (BB, 1) bool
        out_ref[i] = jnp.where(valid, h_new, 0.0)                  # zero-pad outputs
        return jnp.where(valid, h_new, h_prev)                     # carry last valid h

    hid_ref[...] = jax.lax.fori_loop(0, TB, step, hid_ref[...], unroll=True)


def encoder_rnn_forward(input_seq, input_lengths, embedding_table,
                        w_ih, w_hh, b_ih, b_hh, *, time_block=8, batch_block=8):
    """EncoderRNN.forward for n_layers=1, dropout=0, unidirectional GRU.

    w_ih: (3, E, H), w_hh: (3, H, H), b_ih/b_hh: (3, 1, H); gate order [r, z, n];
    weights stored transposed vs torch (x @ w_here == x @ W_torch.T).
    Returns (outputs (T, B, H), hidden (1, B, H)).
    """
    T, B = input_seq.shape
    E = embedding_table.shape[1]
    H = w_hh.shape[-1]

    BB = batch_block
    TB = time_block
    Bp = _round_up(B, BB)             # sublane granularity
    Hp = _round_up(H, 128)            # lane granularity -> unmasked stores
    Tp = _round_up(T, TB)
    padH = Hp - H

    # ---- pack / pad parameters (one-off), gate order [r | z | n] --------------
    w_ih_p = jnp.pad(w_ih, ((0, 0), (0, 0), (0, padH)))            # (3, E, Hp)
    w_hh_p = jnp.pad(w_hh, ((0, 0), (0, padH), (0, padH)))         # (3, Hp, Hp)
    b_ih_p = jnp.pad(b_ih, ((0, 0), (0, 0), (0, padH)))            # (3, 1, Hp)
    b_hh_p = jnp.pad(b_hh, ((0, 0), (0, 0), (0, padH)))            # (3, 1, Hp)

    w_ih_cat = jnp.concatenate([w_ih_p[0], w_ih_p[1], w_ih_p[2]], axis=-1)  # (E, 3Hp)
    w_hh_cat = jnp.concatenate([w_hh_p[0], w_hh_p[1], w_hh_p[2]], axis=-1)  # (Hp, 3Hp)
    # b_ih (all gates) and b_hh (r, z gates) fold into the hoisted input projection;
    # the n-gate hidden bias stays inside the recurrence (it is scaled by r).
    b_fold = jnp.concatenate(
        [b_ih_p[0] + b_hh_p[0], b_ih_p[1] + b_hh_p[1], b_ih_p[2]], axis=-1)  # (1, 3Hp)
    b_hh_n = b_hh_p[2]                                                       # (1, Hp)

    # ---- embedding gather + hoisted input projection (one big MXU matmul) -----
    embedded = jnp.take(embedding_table, input_seq, axis=0)        # (T, B, E)
    gi = jnp.dot(embedded.reshape(T * B, E), w_ih_cat,
                 preferred_element_type=jnp.float32) + b_fold      # (T*B, 3Hp)
    gi = gi.reshape(T, B, 3 * Hp)
    gi = jnp.pad(gi, ((0, Tp - T), (0, Bp - B), (0, 0)))           # (Tp, Bp, 3Hp)

    lengths = jnp.pad(input_lengths.astype(jnp.int32), (0, Bp - B)).reshape(Bp, 1)

    outputs_p, hidden_p = pl.pallas_call(
        gru_block_kernel,
        out_shape=(
            jax.ShapeDtypeStruct((Tp, Bp, Hp), jnp.float32),
            jax.ShapeDtypeStruct((Bp, Hp), jnp.float32),
        ),
        grid_spec=pltpu.PrefetchScalarGridSpec(
            num_scalar_prefetch=0,
            grid=(Bp // BB, Tp // TB),
            in_specs=[
                pl.BlockSpec((TB, BB, 3 * Hp), lambda b, t: (t, b, 0)),  # gi block
                pl.BlockSpec((BB, 1), lambda b, t: (b, 0)),              # lengths
                pl.BlockSpec((Hp, 3 * Hp), lambda b, t: (0, 0)),         # w_hh (invariant)
                pl.BlockSpec((1, Hp), lambda b, t: (0, 0)),              # b_hh_n (invariant)
            ],
            out_specs=[
                pl.BlockSpec((TB, BB, Hp), lambda b, t: (t, b, 0)),      # outputs
                pl.BlockSpec((BB, Hp), lambda b, t: (b, 0)),             # resident hidden
            ],
        ),
        compiler_params=pltpu.CompilerParams(
            dimension_semantics=("parallel", "arbitrary")),  # batch parallel, time serial
    )(gi, lengths, w_hh_cat, b_hh_n)

    outputs = outputs_p[:T, :B, :H]
    hidden = hidden_p[:B, :H][None]
    return outputs, hidden


def _reference_forward(input_seq, input_lengths, embedding_table,
                       w_ih, w_hh, b_ih, b_hh):
    """Pure-JAX reference reproducing packed-GRU semantics."""
    T, B = input_seq.shape
    H = w_hh.shape[-1]
    embedded = jnp.take(embedding_table, input_seq, axis=0)
    lengths = input_lengths.astype(jnp.int32)

    def step(h_prev, inp):
        x, t = inp
        gi = jnp.stack([x @ w_ih[i] + b_ih[i, 0] for i in range(3)])
        gh = jnp.stack([h_prev @ w_hh[i] + b_hh[i, 0] for i in range(3)])
        r = jax.nn.sigmoid(gi[0] + gh[0])
        z = jax.nn.sigmoid(gi[1] + gh[1])
        n = jnp.tanh(gi[2] + r * gh[2])
        h_new = (1.0 - z) * n + z * h_prev
        valid = (t < lengths)[:, None]
        h_next = jnp.where(valid, h_new, h_prev)
        out = jnp.where(valid, h_new, 0.0)
        return h_next, out

    h0 = jnp.zeros((B, H), jnp.float32)
    h_last, outs = jax.lax.scan(step, h0, (embedded, jnp.arange(T)))
    return outs, h_last[None]


if __name__ == "__main__":
    # Small shapes: vocab=20, embedding_size=16, hidden_size=32, seq=8, batch=2
    VOCAB, E, H, T, B = 20, 16, 32, 8, 2

    key = jax.random.PRNGKey(0)
    k_emb, k_wih, k_whh, k_bih, k_bhh, k_seq = jax.random.split(key, 6)

    bound = 1.0 / jnp.sqrt(H)  # PyTorch GRU init range
    embedding_table = jax.random.normal(k_emb, (VOCAB, E), jnp.float32)
    # Stored transposed vs torch (x @ W_here == x @ W_torch.T), gate order [r, z, n].
    w_ih = jax.random.uniform(k_wih, (3, E, H), jnp.float32, -bound, bound)
    w_hh = jax.random.uniform(k_whh, (3, H, H), jnp.float32, -bound, bound)
    b_ih = jax.random.uniform(k_bih, (3, 1, H), jnp.float32, -bound, bound)
    b_hh = jax.random.uniform(k_bhh, (3, 1, H), jnp.float32, -bound, bound)

    input_seq = jax.random.randint(k_seq, (T, B), 0, VOCAB, jnp.int32)
    input_lengths = jnp.array([8, 5], jnp.int32)  # sorted descending (pack_padded_sequence)

    outputs, hidden = jax.jit(encoder_rnn_forward)(
        input_seq, input_lengths, embedding_table, w_ih, w_hh, b_ih, b_hh)
    jax.block_until_ready((outputs, hidden))

    ref_out, ref_hid = _reference_forward(
        input_seq, input_lengths, embedding_table, w_ih, w_hh, b_ih, b_hh)

    assert outputs.shape == (T, B, H) and hidden.shape == (1, B, H)
    assert jnp.allclose(outputs, ref_out, atol=1e-4, rtol=1e-4)
    assert jnp.allclose(hidden, ref_hid, atol=1e-4, rtol=1e-4)
    print("KERNEL_OK")
</pallas_src>

<mosaic_0001>
module attributes {stable_mosaic.version = 11 : i64} {
  func.func @gru_block_kernel(%arg0: i32, %arg1: i32, %arg2: memref<8x8x384xf32, #tpu.memory_space<vmem>>, %arg3: memref<8x1xi32, #tpu.memory_space<vmem>>, %arg4: memref<128x384xf32, #tpu.memory_space<vmem>>, %arg5: memref<1x128xf32, #tpu.memory_space<vmem>>, %arg6: memref<8x8x128xf32, #tpu.memory_space<vmem>>, %arg7: memref<8x128xf32, #tpu.memory_space<vmem>>) attributes {dimension_semantics = [#tpu.dimension_semantics<parallel>, #tpu.dimension_semantics<arbitrary>], iteration_bounds = array<i64: 1, 1>, scalar_prefetch = 0 : i64, scratch_operands = 0 : i64, tpu.core_type = #tpu.core_type<tc>, window_params = [{transform_indices = @transform_0, window_bounds = array<i64: 8, 8, 384>}, {transform_indices = @transform_1, window_bounds = array<i64: 8, 1>}, {pipeline_mode = #tpu.pipeline_mode<synchronous>, transform_indices = @transform_2, window_bounds = array<i64: 128, 384>}, {pipeline_mode = #tpu.pipeline_mode<synchronous>, transform_indices = @transform_3, window_bounds = array<i64: 1, 128>}, {transform_indices = @transform_4, window_bounds = array<i64: 8, 8, 128>}, {transform_indices = @transform_5, window_bounds = array<i64: 8, 128>}]} {
    %c0_i32 = arith.constant 0 : i32
    %0 = arith.cmpi eq, %arg1, %c0_i32 : i32
    %1 = arith.extui %0 : i1 to i32
    %c0_i32_0 = arith.constant 0 : i32
    %2 = arith.cmpi ne, %1, %c0_i32_0 : i32
    scf.if %2 {
      %cst_83 = arith.constant 0.000000e+00 : f32
      %377 = vector.broadcast %cst_83 : f32 to vector<8x128xf32>
      %c0_84 = arith.constant 0 : index
      %c0_85 = arith.constant 0 : index
      %378 = vector.load %arg7[%c0_84, %c0_85] : memref<8x128xf32, #tpu.memory_space<vmem>>, vector<8x128xf32>
      tpu.vector_store %arg7[%c0_84, %c0_85], %377 {strides = array<i32>} : memref<8x128xf32, #tpu.memory_space<vmem>>, vector<8x128xf32>,
    } else {
    }
    %c0 = arith.constant 0 : index
    %c0_1 = arith.constant 0 : index
    %3 = vector.load %arg3[%c0, %c0_1] : memref<8x1xi32, #tpu.memory_space<vmem>>, vector<8x1xi32>
    %c0_2 = arith.constant 0 : index
    %c0_3 = arith.constant 0 : index
    %4 = vector.load %arg4[%c0_2, %c0_3] : memref<128x384xf32, #tpu.memory_space<vmem>>, vector<128x384xf32>
    %c0_4 = arith.constant 0 : index
    %c0_5 = arith.constant 0 : index
    %5 = vector.load %arg5[%c0_4, %c0_5] : memref<1x128xf32, #tpu.memory_space<vmem>>, vector<1x128xf32>
    %c8_i32 = arith.constant 8 : i32
    %6 = arith.muli %arg1, %c8_i32 : i32
    %c0_6 = arith.constant 0 : index
    %c0_7 = arith.constant 0 : index
    %7 = vector.load %arg7[%c0_6, %c0_7] : memref<8x128xf32, #tpu.memory_space<vmem>>, vector<8x128xf32>
    %c0_i32_8 = arith.constant 0 : i32
    %8 = arith.index_cast %c0_i32_8 : i32 to index
    %c0_9 = arith.constant 0 : index
    %c0_10 = arith.constant 0 : index
    %9 = vector.load %arg2[%8, %c0_9, %c0_10] : memref<8x8x384xf32, #tpu.memory_space<vmem>>, vector<1x8x384xf32>
    %10 = vector.shape_cast %9 : vector<1x8x384xf32> to vector<8x384xf32>
    %cst = arith.constant dense<0.000000e+00> : vector<8x384xf32>
    %11 = tpu.matmul %7, %4, %cst {dimension_numbers = #tpu.dot_dimension_numbers<[1], [0], [0], [1], [0, 0, 1, 1], [], []>} : vector<8x128xf32>, vector<128x384xf32>, vector<8x384xf32> -> vector<8x384xf32>
    %12 = vector.extract_strided_slice %10 {offsets = [0, 0], sizes = [8, 128], strides = [1, 1]} : vector<8x384xf32> to vector<8x128xf32>
    %13 = vector.extract_strided_slice %11 {offsets = [0, 0], sizes = [8, 128], strides = [1, 1]} : vector<8x384xf32> to vector<8x128xf32>
    %14 = arith.addf %12, %13 : vector<8x128xf32>
    %15 = arith.negf %14 : vector<8x128xf32>
    %16 = math.exp %15 : vector<8x128xf32>
    %cst_11 = arith.constant 1.000000e+00 : f32
    %17 = vector.broadcast %cst_11 : f32 to vector<8x128xf32>
    %18 = arith.addf %17, %16 : vector<8x128xf32>
    %19 = arith.divf %17, %18 : vector<8x128xf32>
    %20 = vector.extract_strided_slice %10 {offsets = [0, 128], sizes = [8, 128], strides = [1, 1]} : vector<8x384xf32> to vector<8x128xf32>
    %21 = vector.extract_strided_slice %11 {offsets = [0, 128], sizes = [8, 128], strides = [1, 1]} : vector<8x384xf32> to vector<8x128xf32>
    %22 = arith.addf %20, %21 : vector<8x128xf32>
    %23 = arith.negf %22 : vector<8x128xf32>
    %24 = math.exp %23 : vector<8x128xf32>
    %cst_12 = arith.constant 1.000000e+00 : f32
    %25 = vector.broadcast %cst_12 : f32 to vector<8x128xf32>
    %26 = arith.addf %25, %24 : vector<8x128xf32>
    %27 = arith.divf %25, %26 : vector<8x128xf32>
    %28 = vector.extract_strided_slice %10 {offsets = [0, 256], sizes = [8, 128], strides = [1, 1]} : vector<8x384xf32> to vector<8x128xf32>
    %29 = vector.extract_strided_slice %11 {offsets = [0, 256], sizes = [8, 128], strides = [1, 1]} : vector<8x384xf32> to vector<8x128xf32>
    %30 = vector.broadcast %5 : vector<1x128xf32> to vector<8x128xf32>
    %31 = arith.addf %29, %30 : vector<8x128xf32>
    %32 = arith.mulf %19, %31 : vector<8x128xf32>
    %33 = arith.addf %28, %32 : vector<8x128xf32>
    %34 = math.tanh %33 : vector<8x128xf32>
    %cst_13 = arith.constant 1.000000e+00 : f32
    %35 = vector.broadcast %cst_13 : f32 to vector<8x128xf32>
    %36 = arith.subf %35, %27 : vector<8x128xf32>
    %37 = arith.mulf %36, %34 : vector<8x128xf32>
    %38 = arith.mulf %27, %7 : vector<8x128xf32>
    %39 = arith.addf %37, %38 : vector<8x128xf32>
    %40 = arith.addi %6, %c0_i32_8 : i32
    %41 = vector.broadcast %40 : i32 to vector<8x1xi32>
    %42 = arith.cmpi slt, %41, %3 : vector<8x1xi32>
    %cst_14 = arith.constant 0.000000e+00 : f32
    %43 = vector.shape_cast %42 : vector<8x1xi1> to vector<8x1xi1>
    %44 = vector.broadcast %43 : vector<8x1xi1> to vector<8x128xi1>
    %45 = vector.broadcast %cst_14 : f32 to vector<8x128xf32>
    %46 = arith.select %44, %39, %45 : vector<8x128xi1>, vector<8x128xf32>
    %47 = arith.index_cast %c0_i32_8 : i32 to index
    %c0_15 = arith.constant 0 : index
    %c0_16 = arith.constant 0 : index
    %48 = vector.load %arg6[%47, %c0_15, %c0_16] : memref<8x8x128xf32, #tpu.memory_space<vmem>>, vector<1x8x128xf32>
    %49 = vector.shape_cast %48 : vector<1x8x128xf32> to vector<8x128xf32>
    %50 = vector.shape_cast %46 : vector<8x128xf32> to vector<1x8x128xf32>
    tpu.vector_store %arg6[%47, %c0_15, %c0_16], %50 {strides = array<i32>} : memref<8x8x128xf32, #tpu.memory_space<vmem>>, vector<1x8x128xf32>,
    %51 = vector.shape_cast %42 : vector<8x1xi1> to vector<8x1xi1>
    %52 = vector.broadcast %51 : vector<8x1xi1> to vector<8x128xi1>
    %53 = arith.select %52, %39, %7 : vector<8x128xi1>, vector<8x128xf32>
    %c1_i32 = arith.constant 1 : i32
    %54 = arith.index_cast %c1_i32 : i32 to index
    %c0_17 = arith.constant 0 : index
    %c0_18 = arith.constant 0 : index
    %55 = vector.load %arg2[%54, %c0_17, %c0_18] : memref<8x8x384xf32, #tpu.memory_space<vmem>>, vector<1x8x384xf32>
    %56 = vector.shape_cast %55 : vector<1x8x384xf32> to vector<8x384xf32>
    %cst_19 = arith.constant dense<0.000000e+00> : vector<8x384xf32>
    %57 = tpu.matmul %53, %4, %cst_19 {dimension_numbers = #tpu.dot_dimension_numbers<[1], [0], [0], [1], [0, 0, 1, 1], [], []>} : vector<8x128xf32>, vector<128x384xf32>, vector<8x384xf32> -> vector<8x384xf32>
    %58 = vector.extract_strided_slice %56 {offsets = [0, 0], sizes = [8, 128], strides = [1, 1]} : vector<8x384xf32> to vector<8x128xf32>
    %59 = vector.extract_strided_slice %57 {offsets = [0, 0], sizes = [8, 128], strides = [1, 1]} : vector<8x384xf32> to vector<8x128xf32>
    %60 = arith.addf %58, %59 : vector<8x128xf32>
    %61 = arith.negf %60 : vector<8x128xf32>
    %62 = math.exp %61 : vector<8x128xf32>
    %cst_20 = arith.constant 1.000000e+00 : f32
    %63 = vector.broadcast %cst_20 : f32 to vector<8x128xf32>
    %64 = arith.addf %63, %62 : vector<8x128xf32>
    %65 = arith.divf %63, %64 : vector<8x128xf32>
    %66 = vector.extract_strided_slice %56 {offsets = [0, 128], sizes = [8, 128], strides = [1, 1]} : vector<8x384xf32> to vector<8x128xf32>
    %67 = vector.extract_strided_slice %57 {offsets = [0, 128], sizes = [8, 128], strides = [1, 1]} : vector<8x384xf32> to vector<8x128xf32>
    %68 = arith.addf %66, %67 : vector<8x128xf32>
    %69 = arith.negf %68 : vector<8x128xf32>
    %70 = math.exp %69 : vector<8x128xf32>
    %cst_21 = arith.constant 1.000000e+00 : f32
    %71 = vector.broadcast %cst_21 : f32 to vector<8x128xf32>
    %72 = arith.addf %71, %70 : vector<8x128xf32>
    %73 = arith.divf %71, %72 : vector<8x128xf32>
    %74 = vector.extract_strided_slice %56 {offsets = [0, 256], sizes = [8, 128], strides = [1, 1]} : vector<8x384xf32> to vector<8x128xf32>
    %75 = vector.extract_strided_slice %57 {offsets = [0, 256], sizes = [8, 128], strides = [1, 1]} : vector<8x384xf32> to vector<8x128xf32>
    %76 = vector.broadcast %5 : vector<1x128xf32> to vector<8x128xf32>
    %77 = arith.addf %75, %76 : vector<8x128xf32>
    %78 = arith.mulf %65, %77 : vector<8x128xf32>
    %79 = arith.addf %74, %78 : vector<8x128xf32>
    %80 = math.tanh %79 : vector<8x128xf32>
    %cst_22 = arith.constant 1.000000e+00 : f32
    %81 = vector.broadcast %cst_22 : f32 to vector<8x128xf32>
    %82 = arith.subf %81, %73 : vector<8x128xf32>
    %83 = arith.mulf %82, %80 : vector<8x128xf32>
    %84 = arith.mulf %73, %53 : vector<8x128xf32>
    %85 = arith.addf %83, %84 : vector<8x128xf32>
    %86 = arith.addi %6, %c1_i32 : i32
    %87 = vector.broadcast %86 : i32 to vector<8x1xi32>
    %88 = arith.cmpi slt, %87, %3 : vector<8x1xi32>
    %cst_23 = arith.constant 0.000000e+00 : f32
    %89 = vector.shape_cast %88 : vector<8x1xi1> to vector<8x1xi1>
    %90 = vector.broadcast %89 : vector<8x1xi1> to vector<8x128xi1>
    %91 = vector.broadcast %cst_23 : f32 to vector<8x128xf32>
    %92 = arith.select %90, %85, %91 : vector<8x128xi1>, vector<8x128xf32>
    %93 = arith.index_cast %c1_i32 : i32 to index
    %c0_24 = arith.constant 0 : index
    %c0_25 = arith.constant 0 : index
    %94 = vector.load %arg6[%93, %c0_24, %c0_25] : memref<8x8x128xf32, #tpu.memory_space<vmem>>, vector<1x8x128xf32>
    %95 = vector.shape_cast %94 : vector<1x8x128xf32> to vector<8x128xf32>
    %96 = vector.shape_cast %92 : vector<8x128xf32> to vector<1x8x128xf32>
    tpu.vector_store %arg6[%93, %c0_24, %c0_25], %96 {strides = array<i32>} : memref<8x8x128xf32, #tpu.memory_space<vmem>>, vector<1x8x128xf32>,
    %97 = vector.shape_cast %88 : vector<8x1xi1> to vector<8x1xi1>
    %98 = vector.broadcast %97 : vector<8x1xi1> to vector<8x128xi1>
    %99 = arith.select %98, %85, %53 : vector<8x128xi1>, vector<8x128xf32>
    %c2_i32 = arith.constant 2 : i32
    %100 = arith.index_cast %c2_i32 : i32 to index
    %c0_26 = arith.constant 0 : index
    %c0_27 = arith.constant 0 : index
    %101 = vector.load %arg2[%100, %c0_26, %c0_27] : memref<8x8x384xf32, #tpu.memory_space<vmem>>, vector<1x8x384xf32>
    %102 = vector.shape_cast %101 : vector<1x8x384xf32> to vector<8x384xf32>
    %cst_28 = arith.constant dense<0.000000e+00> : vector<8x384xf32>
    %103 = tpu.matmul %99, %4, %cst_28 {dimension_numbers = #tpu.dot_dimension_numbers<[1], [0], [0], [1], [0, 0, 1, 1], [], []>} : vector<8x128xf32>, vector<128x384xf32>, vector<8x384xf32> -> vector<8x384xf32>
    %104 = vector.extract_strided_slice %102 {offsets = [0, 0], sizes = [8, 128], strides = [1, 1]} : vector<8x384xf32> to vector<8x128xf32>
    %105 = vector.extract_strided_slice %103 {offsets = [0, 0], sizes = [8, 128], strides = [1, 1]} : vector<8x384xf32> to vector<8x128xf32>
    %106 = arith.addf %104, %105 : vector<8x128xf32>
    %107 = arith.negf %106 : vector<8x128xf32>
    %108 = math.exp %107 : vector<8x128xf32>
    %cst_29 = arith.constant 1.000000e+00 : f32
    %109 = vector.broadcast %cst_29 : f32 to vector<8x128xf32>
    %110 = arith.addf %109, %108 : vector<8x128xf32>
    %111 = arith.divf %109, %110 : vector<8x128xf32>
    %112 = vector.extract_strided_slice %102 {offsets = [0, 128], sizes = [8, 128], strides = [1, 1]} : vector<8x384xf32> to vector<8x128xf32>
    %113 = vector.extract_strided_slice %103 {offsets = [0, 128], sizes = [8, 128], strides = [1, 1]} : vector<8x384xf32> to vector<8x128xf32>
    %114 = arith.addf %112, %113 : vector<8x128xf32>
    %115 = arith.negf %114 : vector<8x128xf32>
    %116 = math.exp %115 : vector<8x128xf32>
    %cst_30 = arith.constant 1.000000e+00 : f32
    %117 = vector.broadcast %cst_30 : f32 to vector<8x128xf32>
    %118 = arith.addf %117, %116 : vector<8x128xf32>
    %119 = arith.divf %117, %118 : vector<8x128xf32>
    %120 = vector.extract_strided_slice %102 {offsets = [0, 256], sizes = [8, 128], strides = [1, 1]} : vector<8x384xf32> to vector<8x128xf32>
    %121 = vector.extract_strided_slice %103 {offsets = [0, 256], sizes = [8, 128], strides = [1, 1]} : vector<8x384xf32> to vector<8x128xf32>
    %122 = vector.broadcast %5 : vector<1x128xf32> to vector<8x128xf32>
    %123 = arith.addf %121, %122 : vector<8x128xf32>
    %124 = arith.mulf %111, %123 : vector<8x128xf32>
    %125 = arith.addf %120, %124 : vector<8x128xf32>
    %126 = math.tanh %125 : vector<8x128xf32>
    %cst_31 = arith.constant 1.000000e+00 : f32
    %127 = vector.broadcast %cst_31 : f32 to vector<8x128xf32>
    %128 = arith.subf %127, %119 : vector<8x128xf32>
    %129 = arith.mulf %128, %126 : vector<8x128xf32>
    %130 = arith.mulf %119, %99 : vector<8x128xf32>
    %131 = arith.addf %129, %130 : vector<8x128xf32>
    %132 = arith.addi %6, %c2_i32 : i32
    %133 = vector.broadcast %132 : i32 to vector<8x1xi32>
    %134 = arith.cmpi slt, %133, %3 : vector<8x1xi32>
    %cst_32 = arith.constant 0.000000e+00 : f32
    %135 = vector.shape_cast %134 : vector<8x1xi1> to vector<8x1xi1>
    %136 = vector.broadcast %135 : vector<8x1xi1> to vector<8x128xi1>
    %137 = vector.broadcast %cst_32 : f32 to vector<8x128xf32>
    %138 = arith.select %136, %131, %137 : vector<8x128xi1>, vector<8x128xf32>
    %139 = arith.index_cast %c2_i32 : i32 to index
    %c0_33 = arith.constant 0 : index
    %c0_34 = arith.constant 0 : index
    %140 = vector.load %arg6[%139, %c0_33, %c0_34] : memref<8x8x128xf32, #tpu.memory_space<vmem>>, vector<1x8x128xf32>
    %141 = vector.shape_cast %140 : vector<1x8x128xf32> to vector<8x128xf32>
    %142 = vector.shape_cast %138 : vector<8x128xf32> to vector<1x8x128xf32>
    tpu.vector_store %arg6[%139, %c0_33, %c0_34], %142 {strides = array<i32>} : memref<8x8x128xf32, #tpu.memory_space<vmem>>, vector<1x8x128xf32>,
    %143 = vector.shape_cast %134 : vector<8x1xi1> to vector<8x1xi1>
    %144 = vector.broadcast %143 : vector<8x1xi1> to vector<8x128xi1>
    %145 = arith.select %144, %131, %99 : vector<8x128xi1>, vector<8x128xf32>
    %c3_i32 = arith.constant 3 : i32
    %146 = arith.index_cast %c3_i32 : i32 to index
    %c0_35 = arith.constant 0 : index
    %c0_36 = arith.constant 0 : index
    %147 = vector.load %arg2[%146, %c0_35, %c0_36] : memref<8x8x384xf32, #tpu.memory_space<vmem>>, vector<1x8x384xf32>
    %148 = vector.shape_cast %147 : vector<1x8x384xf32> to vector<8x384xf32>
    %cst_37 = arith.constant dense<0.000000e+00> : vector<8x384xf32>
    %149 = tpu.matmul %145, %4, %cst_37 {dimension_numbers = #tpu.dot_dimension_numbers<[1], [0], [0], [1], [0, 0, 1, 1], [], []>} : vector<8x128xf32>, vector<128x384xf32>, vector<8x384xf32> -> vector<8x384xf32>
    %150 = vector.extract_strided_slice %148 {offsets = [0, 0], sizes = [8, 128], strides = [1, 1]} : vector<8x384xf32> to vector<8x128xf32>
    %151 = vector.extract_strided_slice %149 {offsets = [0, 0], sizes = [8, 128], strides = [1, 1]} : vector<8x384xf32> to vector<8x128xf32>
    %152 = arith.addf %150, %151 : vector<8x128xf32>
    %153 = arith.negf %152 : vector<8x128xf32>
    %154 = math.exp %153 : vector<8x128xf32>
    %cst_38 = arith.constant 1.000000e+00 : f32
    %155 = vector.broadcast %cst_38 : f32 to vector<8x128xf32>
    %156 = arith.addf %155, %154 : vector<8x128xf32>
    %157 = arith.divf %155, %156 : vector<8x128xf32>
    %158 = vector.extract_strided_slice %148 {offsets = [0, 128], sizes = [8, 128], strides = [1, 1]} : vector<8x384xf32> to vector<8x128xf32>
    %159 = vector.extract_strided_slice %149 {offsets = [0, 128], sizes = [8, 128], strides = [1, 1]} : vector<8x384xf32> to vector<8x128xf32>
    %160 = arith.addf %158, %159 : vector<8x128xf32>
    %161 = arith.negf %160 : vector<8x128xf32>
    %162 = math.exp %161 : vector<8x128xf32>
    %cst_39 = arith.constant 1.000000e+00 : f32
    %163 = vector.broadcast %cst_39 : f32 to vector<8x128xf32>
    %164 = arith.addf %163, %162 : vector<8x128xf32>
    %165 = arith.divf %163, %164 : vector<8x128xf32>
    %166 = vector.extract_strided_slice %148 {offsets = [0, 256], sizes = [8, 128], strides = [1, 1]} : vector<8x384xf32> to vector<8x128xf32>
    %167 = vector.extract_strided_slice %149 {offsets = [0, 256], sizes = [8, 128], strides = [1, 1]} : vector<8x384xf32> to vector<8x128xf32>
    %168 = vector.broadcast %5 : vector<1x128xf32> to vector<8x128xf32>
    %169 = arith.addf %167, %168 : vector<8x128xf32>
    %170 = arith.mulf %157, %169 : vector<8x128xf32>
    %171 = arith.addf %166, %170 : vector<8x128xf32>
    %172 = math.tanh %171 : vector<8x128xf32>
    %cst_40 = arith.constant 1.000000e+00 : f32
    %173 = vector.broadcast %cst_40 : f32 to vector<8x128xf32>
    %174 = arith.subf %173, %165 : vector<8x128xf32>
    %175 = arith.mulf %174, %172 : vector<8x128xf32>
    %176 = arith.mulf %165, %145 : vector<8x128xf32>
    %177 = arith.addf %175, %176 : vector<8x128xf32>
    %178 = arith.addi %6, %c3_i32 : i32
    %179 = vector.broadcast %178 : i32 to vector<8x1xi32>
    %180 = arith.cmpi slt, %179, %3 : vector<8x1xi32>
    %cst_41 = arith.constant 0.000000e+00 : f32
    %181 = vector.shape_cast %180 : vector<8x1xi1> to vector<8x1xi1>
    %182 = vector.broadcast %181 : vector<8x1xi1> to vector<8x128xi1>
    %183 = vector.broadcast %cst_41 : f32 to vector<8x128xf32>
    %184 = arith.select %182, %177, %183 : vector<8x128xi1>, vector<8x128xf32>
    %185 = arith.index_cast %c3_i32 : i32 to index
    %c0_42 = arith.constant 0 : index
    %c0_43 = arith.constant 0 : index
    %186 = vector.load %arg6[%185, %c0_42, %c0_43] : memref<8x8x128xf32, #tpu.memory_space<vmem>>, vector<1x8x128xf32>
    %187 = vector.shape_cast %186 : vector<1x8x128xf32> to vector<8x128xf32>
    %188 = vector.shape_cast %184 : vector<8x128xf32> to vector<1x8x128xf32>
    tpu.vector_store %arg6[%185, %c0_42, %c0_43], %188 {strides = array<i32>} : memref<8x8x128xf32, #tpu.memory_space<vmem>>, vector<1x8x128xf32>,
    %189 = vector.shape_cast %180 : vector<8x1xi1> to vector<8x1xi1>
    %190 = vector.broadcast %189 : vector<8x1xi1> to vector<8x128xi1>
    %191 = arith.select %190, %177, %145 : vector<8x128xi1>, vector<8x128xf32>
    %c4_i32 = arith.constant 4 : i32
    %192 = arith.index_cast %c4_i32 : i32 to index
    %c0_44 = arith.constant 0 : index
    %c0_45 = arith.constant 0 : index
    %193 = vector.load %arg2[%192, %c0_44, %c0_45] : memref<8x8x384xf32, #tpu.memory_space<vmem>>, vector<1x8x384xf32>
    %194 = vector.shape_cast %193 : vector<1x8x384xf32> to vector<8x384xf32>
    %cst_46 = arith.constant dense<0.000000e+00> : vector<8x384xf32>
    %195 = tpu.matmul %191, %4, %cst_46 {dimension_numbers = #tpu.dot_dimension_numbers<[1], [0], [0], [1], [0, 0, 1, 1], [], []>} : vector<8x128xf32>, vector<128x384xf32>, vector<8x384xf32> -> vector<8x384xf32>
    %196 = vector.extract_strided_slice %194 {offsets = [0, 0], sizes = [8, 128], strides = [1, 1]} : vector<8x384xf32> to vector<8x128xf32>
    %197 = vector.extract_strided_slice %195 {offsets = [0, 0], sizes = [8, 128], strides = [1, 1]} : vector<8x384xf32> to vector<8x128xf32>
    %198 = arith.addf %196, %197 : vector<8x128xf32>
    %199 = arith.negf %198 : vector<8x128xf32>
    %200 = math.exp %199 : vector<8x128xf32>
    %cst_47 = arith.constant 1.000000e+00 : f32
    %201 = vector.broadcast %cst_47 : f32 to vector<8x128xf32>
    %202 = arith.addf %201, %200 : vector<8x128xf32>
    %203 = arith.divf %201, %202 : vector<8x128xf32>
    %204 = vector.extract_strided_slice %194 {offsets = [0, 128], sizes = [8, 128], strides = [1, 1]} : vector<8x384xf32> to vector<8x128xf32>
    %205 = vector.extract_strided_slice %195 {offsets = [0, 128], sizes = [8, 128], strides = [1, 1]} : vector<8x384xf32> to vector<8x128xf32>
    %206 = arith.addf %204, %205 : vector<8x128xf32>
    %207 = arith.negf %206 : vector<8x128xf32>
    %208 = math.exp %207 : vector<8x128xf32>
    %cst_48 = arith.constant 1.000000e+00 : f32
    %209 = vector.broadcast %cst_48 : f32 to vector<8x128xf32>
    %210 = arith.addf %209, %208 : vector<8x128xf32>
    %211 = arith.divf %209, %210 : vector<8x128xf32>
    %212 = vector.extract_strided_slice %194 {offsets = [0, 256], sizes = [8, 128], strides = [1, 1]} : vector<8x384xf32> to vector<8x128xf32>
    %213 = vector.extract_strided_slice %195 {offsets = [0, 256], sizes = [8, 128], strides = [1, 1]} : vector<8x384xf32> to vector<8x128xf32>
    %214 = vector.broadcast %5 : vector<1x128xf32> to vector<8x128xf32>
    %215 = arith.addf %213, %214 : vector<8x128xf32>
    %216 = arith.mulf %203, %215 : vector<8x128xf32>
    %217 = arith.addf %212, %216 : vector<8x128xf32>
    %218 = math.tanh %217 : vector<8x128xf32>
    %cst_49 = arith.constant 1.000000e+00 : f32
    %219 = vector.broadcast %cst_49 : f32 to vector<8x128xf32>
    %220 = arith.subf %219, %211 : vector<8x128xf32>
    %221 = arith.mulf %220, %218 : vector<8x128xf32>
    %222 = arith.mulf %211, %191 : vector<8x128xf32>
    %223 = arith.addf %221, %222 : vector<8x128xf32>
    %224 = arith.addi %6, %c4_i32 : i32
    %225 = vector.broadcast %224 : i32 to vector<8x1xi32>
    %226 = arith.cmpi slt, %225, %3 : vector<8x1xi32>
    %cst_50 = arith.constant 0.000000e+00 : f32
    %227 = vector.shape_cast %226 : vector<8x1xi1> to vector<8x1xi1>
    %228 = vector.broadcast %227 : vector<8x1xi1> to vector<8x128xi1>
    %229 = vector.broadcast %cst_50 : f32 to vector<8x128xf32>
    %230 = arith.select %228, %223, %229 : vector<8x128xi1>, vector<8x128xf32>
    %231 = arith.index_cast %c4_i32 : i32 to index
    %c0_51 = arith.constant 0 : index
    %c0_52 = arith.constant 0 : index
    %232 = vector.load %arg6[%231, %c0_51, %c0_52] : memref<8x8x128xf32, #tpu.memory_space<vmem>>, vector<1x8x128xf32>
    %233 = vector.shape_cast %232 : vector<1x8x128xf32> to vector<8x128xf32>
    %234 = vector.shape_cast %230 : vector<8x128xf32> to vector<1x8x128xf32>
    tpu.vector_store %arg6[%231, %c0_51, %c0_52], %234 {strides = array<i32>} : memref<8x8x128xf32, #tpu.memory_space<vmem>>, vector<1x8x128xf32>,
    %235 = vector.shape_cast %226 : vector<8x1xi1> to vector<8x1xi1>
    %236 = vector.broadcast %235 : vector<8x1xi1> to vector<8x128xi1>
    %237 = arith.select %236, %223, %191 : vector<8x128xi1>, vector<8x128xf32>
    %c5_i32 = arith.constant 5 : i32
    %238 = arith.index_cast %c5_i32 : i32 to index
    %c0_53 = arith.constant 0 : index
    %c0_54 = arith.constant 0 : index
    %239 = vector.load %arg2[%238, %c0_53, %c0_54] : memref<8x8x384xf32, #tpu.memory_space<vmem>>, vector<1x8x384xf32>
    %240 = vector.shape_cast %239 : vector<1x8x384xf32> to vector<8x384xf32>
    %cst_55 = arith.constant dense<0.000000e+00> : vector<8x384xf32>
    %241 = tpu.matmul %237, %4, %cst_55 {dimension_numbers = #tpu.dot_dimension_numbers<[1], [0], [0], [1], [0, 0, 1, 1], [], []>} : vector<8x128xf32>, vector<128x384xf32>, vector<8x384xf32> -> vector<8x384xf32>
    %242 = vector.extract_strided_slice %240 {offsets = [0, 0], sizes = [8, 128], strides = [1, 1]} : vector<8x384xf32> to vector<8x128xf32>
    %243 = vector.extract_strided_slice %241 {offsets = [0, 0], sizes = [8, 128], strides = [1, 1]} : vector<8x384xf32> to vector<8x128xf32>
    %244 = arith.addf %242, %243 : vector<8x128xf32>
    %245 = arith.negf %244 : vector<8x128xf32>
    %246 = math.exp %245 : vector<8x128xf32>
    %cst_56 = arith.constant 1.000000e+00 : f32
    %247 = vector.broadcast %cst_56 : f32 to vector<8x128xf32>
    %248 = arith.addf %247, %246 : vector<8x128xf32>
    %249 = arith.divf %247, %248 : vector<8x128xf32>
    %250 = vector.extract_strided_slice %240 {offsets = [0, 128], sizes = [8, 128], strides = [1, 1]} : vector<8x384xf32> to vector<8x128xf32>
    %251 = vector.extract_strided_slice %241 {offsets = [0, 128], sizes = [8, 128], strides = [1, 1]} : vector<8x384xf32> to vector<8x128xf32>
    %252 = arith.addf %250, %251 : vector<8x128xf32>
    %253 = arith.negf %252 : vector<8x128xf32>
    %254 = math.exp %253 : vector<8x128xf32>
    %cst_57 = arith.constant 1.000000e+00 : f32
    %255 = vector.broadcast %cst_57 : f32 to vector<8x128xf32>
    %256 = arith.addf %255, %254 : vector<8x128xf32>
    %257 = arith.divf %255, %256 : vector<8x128xf32>
    %258 = vector.extract_strided_slice %240 {offsets = [0, 256], sizes = [8, 128], strides = [1, 1]} : vector<8x384xf32> to vector<8x128xf32>
    %259 = vector.extract_strided_slice %241 {offsets = [0, 256], sizes = [8, 128], strides = [1, 1]} : vector<8x384xf32> to vector<8x128xf32>
    %260 = vector.broadcast %5 : vector<1x128xf32> to vector<8x128xf32>
    %261 = arith.addf %259, %260 : vector<8x128xf32>
    %262 = arith.mulf %249, %261 : vector<8x128xf32>
    %263 = arith.addf %258, %262 : vector<8x128xf32>
    %264 = math.tanh %263 : vector<8x128xf32>
    %cst_58 = arith.constant 1.000000e+00 : f32
    %265 = vector.broadcast %cst_58 : f32 to vector<8x128xf32>
    %266 = arith.subf %265, %257 : vector<8x128xf32>
    %267 = arith.mulf %266, %264 : vector<8x128xf32>
    %268 = arith.mulf %257, %237 : vector<8x128xf32>
    %269 = arith.addf %267, %268 : vector<8x128xf32>
    %270 = arith.addi %6, %c5_i32 : i32
    %271 = vector.broadcast %270 : i32 to vector<8x1xi32>
    %272 = arith.cmpi slt, %271, %3 : vector<8x1xi32>
    %cst_59 = arith.constant 0.000000e+00 : f32
    %273 = vector.shape_cast %272 : vector<8x1xi1> to vector<8x1xi1>
    %274 = vector.broadcast %273 : vector<8x1xi1> to vector<8x128xi1>
    %275 = vector.broadcast %cst_59 : f32 to vector<8x128xf32>
    %276 = arith.select %274, %269, %275 : vector<8x128xi1>, vector<8x128xf32>
    %277 = arith.index_cast %c5_i32 : i32 to index
    %c0_60 = arith.constant 0 : index
    %c0_61 = arith.constant 0 : index
    %278 = vector.load %arg6[%277, %c0_60, %c0_61] : memref<8x8x128xf32, #tpu.memory_space<vmem>>, vector<1x8x128xf32>
    %279 = vector.shape_cast %278 : vector<1x8x128xf32> to vector<8x128xf32>
    %280 = vector.shape_cast %276 : vector<8x128xf32> to vector<1x8x128xf32>
    tpu.vector_store %arg6[%277, %c0_60, %c0_61], %280 {strides = array<i32>} : memref<8x8x128xf32, #tpu.memory_space<vmem>>, vector<1x8x128xf32>,
    %281 = vector.shape_cast %272 : vector<8x1xi1> to vector<8x1xi1>
    %282 = vector.broadcast %281 : vector<8x1xi1> to vector<8x128xi1>
    %283 = arith.select %282, %269, %237 : vector<8x128xi1>, vector<8x128xf32>
    %c6_i32 = arith.constant 6 : i32
    %284 = arith.index_cast %c6_i32 : i32 to index
    %c0_62 = arith.constant 0 : index
    %c0_63 = arith.constant 0 : index
    %285 = vector.load %arg2[%284, %c0_62, %c0_63] : memref<8x8x384xf32, #tpu.memory_space<vmem>>, vector<1x8x384xf32>
    %286 = vector.shape_cast %285 : vector<1x8x384xf32> to vector<8x384xf32>
    %cst_64 = arith.constant dense<0.000000e+00> : vector<8x384xf32>
    %287 = tpu.matmul %283, %4, %cst_64 {dimension_numbers = #tpu.dot_dimension_numbers<[1], [0], [0], [1], [0, 0, 1, 1], [], []>} : vector<8x128xf32>, vector<128x384xf32>, vector<8x384xf32> -> vector<8x384xf32>
    %288 = vector.extract_strided_slice %286 {offsets = [0, 0], sizes = [8, 128], strides = [1, 1]} : vector<8x384xf32> to vector<8x128xf32>
    %289 = vector.extract_strided_slice %287 {offsets = [0, 0], sizes = [8, 128], strides = [1, 1]} : vector<8x384xf32> to vector<8x128xf32>
    %290 = arith.addf %288, %289 : vector<8x128xf32>
    %291 = arith.negf %290 : vector<8x128xf32>
    %292 = math.exp %291 : vector<8x128xf32>
    %cst_65 = arith.constant 1.000000e+00 : f32
    %293 = vector.broadcast %cst_65 : f32 to vector<8x128xf32>
    %294 = arith.addf %293, %292 : vector<8x128xf32>
    %295 = arith.divf %293, %294 : vector<8x128xf32>
    %296 = vector.extract_strided_slice %286 {offsets = [0, 128], sizes = [8, 128], strides = [1, 1]} : vector<8x384xf32> to vector<8x128xf32>
    %297 = vector.extract_strided_slice %287 {offsets = [0, 128], sizes = [8, 128], strides = [1, 1]} : vector<8x384xf32> to vector<8x128xf32>
    %298 = arith.addf %296, %297 : vector<8x128xf32>
    %299 = arith.negf %298 : vector<8x128xf32>
    %300 = math.exp %299 : vector<8x128xf32>
    %cst_66 = arith.constant 1.000000e+00 : f32
    %301 = vector.broadcast %cst_66 : f32 to vector<8x128xf32>
    %302 = arith.addf %301, %300 : vector<8x128xf32>
    %303 = arith.divf %301, %302 : vector<8x128xf32>
    %304 = vector.extract_strided_slice %286 {offsets = [0, 256], sizes = [8, 128], strides = [1, 1]} : vector<8x384xf32> to vector<8x128xf32>
    %305 = vector.extract_strided_slice %287 {offsets = [0, 256], sizes = [8, 128], strides = [1, 1]} : vector<8x384xf32> to vector<8x128xf32>
    %306 = vector.broadcast %5 : vector<1x128xf32> to vector<8x128xf32>
    %307 = arith.addf %305, %306 : vector<8x128xf32>
    %308 = arith.mulf %295, %307 : vector<8x128xf32>
    %309 = arith.addf %304, %308 : vector<8x128xf32>
    %310 = math.tanh %309 : vector<8x128xf32>
    %cst_67 = arith.constant 1.000000e+00 : f32
    %311 = vector.broadcast %cst_67 : f32 to vector<8x128xf32>
    %312 = arith.subf %311, %303 : vector<8x128xf32>
    %313 = arith.mulf %312, %310 : vector<8x128xf32>
    %314 = arith.mulf %303, %283 : vector<8x128xf32>
    %315 = arith.addf %313, %314 : vector<8x128xf32>
    %316 = arith.addi %6, %c6_i32 : i32
    %317 = vector.broadcast %316 : i32 to vector<8x1xi32>
    %318 = arith.cmpi slt, %317, %3 : vector<8x1xi32>
    %cst_68 = arith.constant 0.000000e+00 : f32
    %319 = vector.shape_cast %318 : vector<8x1xi1> to vector<8x1xi1>
    %320 = vector.broadcast %319 : vector<8x1xi1> to vector<8x128xi1>
    %321 = vector.broadcast %cst_68 : f32 to vector<8x128xf32>
    %322 = arith.select %320, %315, %321 : vector<8x128xi1>, vector<8x128xf32>
    %323 = arith.index_cast %c6_i32 : i32 to index
    %c0_69 = arith.constant 0 : index
    %c0_70 = arith.constant 0 : index
    %324 = vector.load %arg6[%323, %c0_69, %c0_70] : memref<8x8x128xf32, #tpu.memory_space<vmem>>, vector<1x8x128xf32>
    %325 = vector.shape_cast %324 : vector<1x8x128xf32> to vector<8x128xf32>
    %326 = vector.shape_cast %322 : vector<8x128xf32> to vector<1x8x128xf32>
    tpu.vector_store %arg6[%323, %c0_69, %c0_70], %326 {strides = array<i32>} : memref<8x8x128xf32, #tpu.memory_space<vmem>>, vector<1x8x128xf32>,
    %327 = vector.shape_cast %318 : vector<8x1xi1> to vector<8x1xi1>
    %328 = vector.broadcast %327 : vector<8x1xi1> to vector<8x128xi1>
    %329 = arith.select %328, %315, %283 : vector<8x128xi1>, vector<8x128xf32>
    %c7_i32 = arith.constant 7 : i32
    %330 = arith.index_cast %c7_i32 : i32 to index
    %c0_71 = arith.constant 0 : index
    %c0_72 = arith.constant 0 : index
    %331 = vector.load %arg2[%330, %c0_71, %c0_72] : memref<8x8x384xf32, #tpu.memory_space<vmem>>, vector<1x8x384xf32>
    %332 = vector.shape_cast %331 : vector<1x8x384xf32> to vector<8x384xf32>
    %cst_73 = arith.constant dense<0.000000e+00> : vector<8x384xf32>
    %333 = tpu.matmul %329, %4, %cst_73 {dimension_numbers = #tpu.dot_dimension_numbers<[1], [0], [0], [1], [0, 0, 1, 1], [], []>} : vector<8x128xf32>, vector<128x384xf32>, vector<8x384xf32> -> vector<8x384xf32>
    %334 = vector.extract_strided_slice %332 {offsets = [0, 0], sizes = [8, 128], strides = [1, 1]} : vector<8x384xf32> to vector<8x128xf32>
    %335 = vector.extract_strided_slice %333 {offsets = [0, 0], sizes = [8, 128], strides = [1, 1]} : vector<8x384xf32> to vector<8x128xf32>
    %336 = arith.addf %334, %335 : vector<8x128xf32>
    %337 = arith.negf %336 : vector<8x128xf32>
    %338 = math.exp %337 : vector<8x128xf32>
    %cst_74 = arith.constant 1.000000e+00 : f32
    %339 = vector.broadcast %cst_74 : f32 to vector<8x128xf32>
    %340 = arith.addf %339, %338 : vector<8x128xf32>
    %341 = arith.divf %339, %340 : vector<8x128xf32>
    %342 = vector.extract_strided_slice %332 {offsets = [0, 128], sizes = [8, 128], strides = [1, 1]} : vector<8x384xf32> to vector<8x128xf32>
    %343 = vector.extract_strided_slice %333 {offsets = [0, 128], sizes = [8, 128], strides = [1, 1]} : vector<8x384xf32> to vector<8x128xf32>
    %344 = arith.addf %342, %343 : vector<8x128xf32>
    %345 = arith.negf %344 : vector<8x128xf32>
    %346 = math.exp %345 : vector<8x128xf32>
    %cst_75 = arith.constant 1.000000e+00 : f32
    %347 = vector.broadcast %cst_75 : f32 to vector<8x128xf32>
    %348 = arith.addf %347, %346 : vector<8x128xf32>
    %349 = arith.divf %347, %348 : vector<8x128xf32>
    %350 = vector.extract_strided_slice %332 {offsets = [0, 256], sizes = [8, 128], strides = [1, 1]} : vector<8x384xf32> to vector<8x128xf32>
    %351 = vector.extract_strided_slice %333 {offsets = [0, 256], sizes = [8, 128], strides = [1, 1]} : vector<8x384xf32> to vector<8x128xf32>
    %352 = vector.broadcast %5 : vector<1x128xf32> to vector<8x128xf32>
    %353 = arith.addf %351, %352 : vector<8x128xf32>
    %354 = arith.mulf %341, %353 : vector<8x128xf32>
    %355 = arith.addf %350, %354 : vector<8x128xf32>
    %356 = math.tanh %355 : vector<8x128xf32>
    %cst_76 = arith.constant 1.000000e+00 : f32
    %357 = vector.broadcast %cst_76 : f32 to vector<8x128xf32>
    %358 = arith.subf %357, %349 : vector<8x128xf32>
    %359 = arith.mulf %358, %356 : vector<8x128xf32>
    %360 = arith.mulf %349, %329 : vector<8x128xf32>
    %361 = arith.addf %359, %360 : vector<8x128xf32>
    %362 = arith.addi %6, %c7_i32 : i32
    %363 = vector.broadcast %362 : i32 to vector<8x1xi32>
    %364 = arith.cmpi slt, %363, %3 : vector<8x1xi32>
    %cst_77 = arith.constant 0.000000e+00 : f32
    %365 = vector.shape_cast %364 : vector<8x1xi1> to vector<8x1xi1>
    %366 = vector.broadcast %365 : vector<8x1xi1> to vector<8x128xi1>
    %367 = vector.broadcast %cst_77 : f32 to vector<8x128xf32>
    %368 = arith.select %366, %361, %367 : vector<8x128xi1>, vector<8x128xf32>
    %369 = arith.index_cast %c7_i32 : i32 to index
    %c0_78 = arith.constant 0 : index
    %c0_79 = arith.constant 0 : index
    %370 = vector.load %arg6[%369, %c0_78, %c0_79] : memref<8x8x128xf32, #tpu.memory_space<vmem>>, vector<1x8x128xf32>
    %371 = vector.shape_cast %370 : vector<1x8x128xf32> to vector<8x128xf32>
    %372 = vector.shape_cast %368 : vector<8x128xf32> to vector<1x8x128xf32>
    tpu.vector_store %arg6[%369, %c0_78, %c0_79], %372 {strides = array<i32>} : memref<8x8x128xf32, #tpu.memory_space<vmem>>, vector<1x8x128xf32>,
    %373 = vector.shape_cast %364 : vector<8x1xi1> to vector<8x1xi1>
    %374 = vector.broadcast %373 : vector<8x1xi1> to vector<8x128xi1>
    %375 = arith.select %374, %361, %329 : vector<8x128xi1>, vector<8x128xf32>
    %c8_i32_80 = arith.constant 8 : i32
    %c0_81 = arith.constant 0 : index
    %c0_82 = arith.constant 0 : index
    %376 = vector.load %arg7[%c0_81, %c0_82] : memref<8x128xf32, #tpu.memory_space<vmem>>, vector<8x128xf32>
    tpu.vector_store %arg7[%c0_81, %c0_82], %375 {strides = array<i32>} : memref<8x128xf32, #tpu.memory_space<vmem>>, vector<8x128xf32>,
    return
  }
  func.func @transform_0(%arg0: i32, %arg1: i32) -> (i32, i32, i32) {
    %c0_i32 = arith.constant 0 : i32
    %c0_i32_0 = arith.constant 0 : i32
    return %arg1, %arg0, %c0_i32 : i32, i32, i32
  }
  func.func @transform_1(%arg0: i32, %arg1: i32) -> (i32, i32) {
    %c0_i32 = arith.constant 0 : i32
    %c0_i32_0 = arith.constant 0 : i32
    return %arg0, %c0_i32 : i32, i32
  }
  func.func @transform_2(%arg0: i32, %arg1: i32) -> (i32, i32) {
    %c0_i32 = arith.constant 0 : i32
    %c0_i32_0 = arith.constant 0 : i32
    %c0_i32_1 = arith.constant 0 : i32
    return %c0_i32, %c0_i32_0 : i32, i32
  }
  func.func @transform_3(%arg0: i32, %arg1: i32) -> (i32, i32) {
    %c0_i32 = arith.constant 0 : i32
    %c0_i32_0 = arith.constant 0 : i32
    %c0_i32_1 = arith.constant 0 : i32
    return %c0_i32, %c0_i32_0 : i32, i32
  }
  func.func @transform_4(%arg0: i32, %arg1: i32) -> (i32, i32, i32) {
    %c0_i32 = arith.constant 0 : i32
    %c0_i32_0 = arith.constant 0 : i32
    return %arg1, %arg0, %c0_i32 : i32, i32, i32
  }
  func.func @transform_5(%arg0: i32, %arg1: i32) -> (i32, i32) {
    %c0_i32 = arith.constant 0 : i32
    %c0_i32_0 = arith.constant 0 : i32
    return %arg0, %c0_i32 : i32, i32
  }
}

</mosaic_0001>

<bundles_post_ra>
// kernel: encoder_rnn_forward.1
= control target key start
LH: loop header
LB: loop body
LE: loop exit
PB: predicated region body
PF: predicated region fallthrough
CT: control target
= control target key end

     0   :  { %v2329_v19 = vmov 0   ;;  %v1269_v48 = vmov 0.0   ;;  %s2323_s2 = inlined_call_operand.vmem [shape: f32[128,384], index: 2, kind: input, shape index: {}]   ;;  %s2324_s1 = inlined_call_operand.vmem [shape: s32[8,1], index: 1, kind: input, shape index: {}]   ;;  %s2325_s3 = inlined_call_operand.vmem [shape: f32[1,128], index: 3, kind: input, shape index: {}]   ;;  %s2326_s0 = inlined_call_operand.vmem [shape: f32[8,8,384], index: 0, kind: input, shape index: {}]   ;;  %s2327_s4 = inlined_call_operand.vmem [shape: f32[8,8,128], index: 4, kind: output, shape index: {0}]   ;;  %s2328_s5 = inlined_call_operand.vmem [shape: f32[8,128], index: 5, kind: output, shape index: {1}]  }
   0x1   :  { %v1303_v0 = vld [vmem:[%s2323_s2 + $0x168] sm:$0xff]  ;;  %v1308_v1 = vld [vmem:[%s2323_s2 + $0x170] sm:$0xff]  ;;  %v1320_v3 = vld [vmem:[%s2323_s2 + $0x158] sm:$0xff]  ;;  %1131 = vset.pattern.permute.xlu0 %v2329_v19  ;;  %1132 = vset.pattern.permute.xlu1 %v2329_v19 }
   0x2   :  { %v1313_v2 = vld [vmem:[%s2323_s2 + $0x150] sm:$0xff]  ;;  %79 = vmatpush.msra.mxu0 %v1303_v0  ;;  %99 = vmatpush.msra.mxu1 %v1308_v1  ;;  %v1325_v4 = vld [vmem:[%s2323_s2 + $0x138] sm:$0xff]  ;;  %v1330_v5 = vld [vmem:[%s2323_s2 + $0x140] sm:$0xff] }
   0x3   :  { %204 = vmatpush.msra.mxu3 %v1303_v0  ;;  %v1338_v6 = vld [vmem:[%s2323_s2 + $0x120] sm:$0xff]  ;;  %v1343_v7 = vld [vmem:[%s2323_s2 + $0x128] sm:$0xff]  ;;  %v1356_v9 = vld [vmem:[%s2323_s2 + $0x110] sm:$0xff]  ;;  %1133 = vset.pattern.permute.xlu2 %v2329_v19 }
   0x4   :  { %80 = vmatpush.msra.mxu0 %v1313_v2  ;;  %100 = vmatpush.msra.mxu1 %v1320_v3  ;;  %v1351_v8 = vld [vmem:[%s2323_s2 + $0x108] sm:$0xff]  ;;  %v1364_v10 = vld [vmem:[%s2323_s2 + $0xf0] sm:$0xff]  ;;  %v1369_v11 = vld [vmem:[%s2323_s2 + $0xf8] sm:$0xff] }
   0x5   :  { %205 = vmatpush.msra.mxu3 %v1313_v2  ;;  %v1374_v12 = vld [vmem:[%s2323_s2 + $0x178] sm:$0xff]  ;;  %v1382_v13 = vld [vmem:[%s2323_s2 + $0x160] sm:$0xff]  ;;  %v1401_v16 = vld [vmem:[%s2323_s2 + $0x148] sm:$0xff] }
   0x6   :  { %81 = vmatpush.msra.mxu0 %v1325_v4  ;;  %101 = vmatpush.msra.mxu1 %v1330_v5  ;;  %v1387_v14 = vld [vmem:[%s2323_s2 + $0xd8] sm:$0xff]  ;;  %v1392_v15 = vld [vmem:[%s2323_s2 + $0xe0] sm:$0xff]  ;;  %v1411_v18 = vld [vmem:[%s2323_s2 + $0xc8] sm:$0xff] }
   0x7   :  { %206 = vmatpush.msra.mxu3 %v1325_v4  ;;  %119 = vmatpush.msra.mxu2 %v1374_v12  ;;  %v1406_v17 = vld [vmem:[%s2323_s2 + $0xc0] sm:$0xff]  ;;  %v1420_v20 = vld [vmem:[%s2323_s2 + $0x130] sm:$0xff]  ;;  %v1425_v21 = vld [vmem:[%s2323_s2 + $0xa8] sm:$0xff] }
   0x8   :  { %82 = vmatpush.msra.mxu0 %v1338_v6  ;;  %102 = vmatpush.msra.mxu1 %v1343_v7  ;;  %v1430_v22 = vld [vmem:[%s2323_s2 + $0xb0] sm:$0xff]  ;;  %v1439_v23 = vld [vmem:[%s2323_s2 + $0x118] sm:$0xff]  ;;  %v1455_v26 = vld [vmem:[%s2324_s1] sm:$0xff] }
   0x9   :  { %207 = vmatpush.msra.mxu3 %v1338_v6  ;;  %120 = vmatpush.msra.mxu2 %v1382_v13  ;;  %v1444_v24 = vld [vmem:[%s2323_s2 + $0x90] sm:$0xff]  ;;  %v1449_v25 = vld [vmem:[%s2323_s2 + $0x98] sm:$0xff]  ;;  %2349 = vst [vmem:[#allocation2_spill] sm:$0xff] %v1455_v26  ;;  %v1463_v27 = vld [vmem:[%s2323_s2 + $0x100] sm:$0xff]  ;;  %vm1079_vm0 = vcmp.gt.s32.totalorder %v1455_v26, 0  ;;  %vm1085_vm1 = vcmp.gt.s32.totalorder %v1455_v26, 1 }
   0xa   :  { %83 = vmatpush.msra.mxu0 %v1351_v8  ;;  %103 = vmatpush.msra.mxu1 %v1356_v9  ;;  %v1469_v28 = vld [vmem:[%s2323_s2 + $0x78] sm:$0xff]  ;;  %v1474_v29 = vld [vmem:[%s2323_s2 + $0x80] sm:$0xff]  ;;  %v192_v30 = vsel %vm1079_vm0, 1, %v2329_v19  ;;  %v1484_v31 = vld [vmem:[%s2323_s2 + $0xe8] sm:$0xff]  ;;  %v315_v41 = vsel %vm1085_vm1, 1, %v2329_v19  ;;  %vm1120_vm2 = vcmp.gt.s32.totalorder %v1455_v26, 6 }
   0xb   :  { %208 = vmatpush.msra.mxu3 %v1351_v8  ;;  %121 = vmatpush.msra.mxu2 %v1401_v16  ;;  %v1489_v32 = vld [vmem:[%s2323_s2 + $0x60] sm:$0xff]  ;;  %v1494_v33 = vld [vmem:[%s2323_s2 + $0x68] sm:$0xff]  ;;  %v1502_v34 = vld [vmem:[%s2323_s2 + $0xd0] sm:$0xff]  ;;  %v935_v50 = vsel %vm1120_vm2, 1, %v2329_v19 }
   0xc   :  { %84 = vmatpush.msra.mxu0 %v1364_v10  ;;  %104 = vmatpush.msra.mxu1 %v1369_v11  ;;  %v1507_v35 = vld [vmem:[%s2323_s2 + $0x48] sm:$0xff]  ;;  %v1512_v36 = vld [vmem:[%s2323_s2 + $0x50] sm:$0xff]  ;;  %v1522_v37 = vld [vmem:[%s2323_s2 + $0xb8] sm:$0xff] }
   0xd   :  { %209 = vmatpush.msra.mxu3 %v1364_v10  ;;  %122 = vmatpush.msra.mxu2 %v1420_v20  ;;  %v1527_v38 = vld [vmem:[%s2323_s2 + $0x30] sm:$0xff]  ;;  %v1532_v39 = vld [vmem:[%s2323_s2 + $0x38] sm:$0xff]  ;;  %v1541_v40 = vld [vmem:[%s2323_s2 + $0xa0] sm:$0xff] }
   0xe   :  { %85 = vmatpush.msra.mxu0 %v1387_v14  ;;  %105 = vmatpush.msra.mxu1 %v1392_v15  ;;  %2350 = vst [vmem:[#allocation3_spill] sm:$0xff] %v1532_v39  ;;  %v1547_v42 = vld [vmem:[%s2323_s2 + $0x18] sm:$0xff]  ;;  %v1552_v43 = vld [vmem:[%s2323_s2 + $0x20] sm:$0xff]  ;;  %v1561_v44 = vld [vmem:[%s2323_s2 + $0x88] sm:$0xff] }
   0xf   :  { %210 = vmatpush.msra.mxu3 %v1387_v14  ;;  %123 = vmatpush.msra.mxu2 %v1439_v23  ;;  %2351 = vst [vmem:[#allocation4_spill] sm:$0xff] %v1547_v42  ;;  %v1566_v45 = vld [vmem:[%s2323_s2] sm:$0xff]  ;;  %v1571_v46 = vld [vmem:[%s2323_s2 + $0x8] sm:$0xff]  ;;  %v1580_v47 = vld [vmem:[%s2323_s2 + $0x70] sm:$0xff] }
  0x10   :  { %86 = vmatpush.msra.mxu0 %v1406_v17  ;;  %106 = vmatpush.msra.mxu1 %v1411_v18  ;;  %2352 = vst [vmem:[#allocation5_spill] sm:$0xff] %v1552_v43  ;;  %v1589_v49 = vld [vmem:[%s2323_s2 + $0x58] sm:$0xff]  ;;  %v1597_v51 = vld [vmem:[%s2323_s2 + $0x40] sm:$0xff]  ;;  %v1606_v52 = vld [vmem:[%s2323_s2 + $0x28] sm:$0xff] }
  0x11   :  { %211 = vmatpush.msra.mxu3 %v1406_v17  ;;  %124 = vmatpush.msra.mxu2 %v1463_v27  ;;  %2353 = vst [vmem:[#allocation6_spill] sm:$0xff] %v1566_v45  ;;  %v1614_v53 = vld [vmem:[%s2323_s2 + $0x10] sm:$0xff]  ;;  %v76_v54 = vld [vmem:[%s2326_s0] sm:$0xff]  ;;  %v77_v55 = vld [vmem:[%s2326_s0 + $0x8] sm:$0xff] }
  0x12   :  { %87 = vmatpush.msra.mxu0 %v1425_v21  ;;  %107 = vmatpush.msra.mxu1 %v1430_v22  ;;  %2354 = vst [vmem:[#allocation7_spill] sm:$0xff] %v1571_v46 }
  0x13   :  { %194 = vperm.xlu0 %1131, %v192_v30   ;;  %125 = vmatpush.msra.mxu2 %v1484_v31  ;;  %2355 = vst [vmem:[#allocation8_spill] sm:$0xff] %v1606_v52 }
  0x14   :  { %88 = vmatpush.msra.mxu0 %v1444_v24  ;;  %108 = vmatpush.msra.mxu1 %v1449_v25  ;;  %2356 = vst [vmem:[#allocation9_spill] sm:$0xff] %v1614_v53 }
  0x15   :  { %212 = vmatpush.msra.mxu3 %v1425_v21  ;;  %126 = vmatpush.msra.mxu2 %v1502_v34 }
  0x16   :  { %89 = vmatpush.msra.mxu0 %v1469_v28  ;;  %109 = vmatpush.msra.mxu1 %v1474_v29 }
  0x17   :  { %213 = vmatpush.msra.mxu3 %v1444_v24  ;;  %127 = vmatpush.msra.mxu2 %v1522_v37 }
  0x18   :  { %90 = vmatpush.msra.mxu0 %v1489_v32  ;;  %110 = vmatpush.msra.mxu1 %v1494_v33 }
  0x19   :  { %214 = vmatpush.msra.mxu3 %v1469_v28  ;;  %128 = vmatpush.msra.mxu2 %v1541_v40 }
  0x1a   :  { %91 = vmatpush.msra.mxu0 %v1507_v35  ;;  %111 = vmatpush.msra.mxu1 %v1512_v36 }
  0x1b   :  { %317 = vperm.xlu0 %1131, %v315_v41   ;;  %129 = vmatpush.msra.mxu2 %v1561_v44 }
  0x1c   :  { %92 = vmatpush.msra.mxu0 %v1527_v38  ;;  %112 = vmatpush.msra.mxu1 %v1532_v39 }
  0x1d   :  { %215 = vmatpush.msra.mxu3 %v1489_v32  ;;  %130 = vmatpush.msra.mxu2 %v1580_v47 }
  0x1e   :  { %93 = vmatpush.msra.mxu0 %v1547_v42  ;;  %113 = vmatpush.msra.mxu1 %v1552_v43 }
  0x1f   :  { %216 = vmatpush.msra.mxu3 %v1507_v35  ;;  %131 = vmatpush.msra.mxu2 %v1589_v49 }
  0x20   :  { %94 = vmatpush.msra.mxu0 %v1566_v45  ;;  %114 = vmatpush.msra.mxu1 %v1571_v46 }
  0x21   :  { %95 = vmatmul.f32.vlgmr.msra.gmra.mxu0 %v1269_v48  ;;  %115 = vmatmul.f32.vlgmr.msra.gmra.mxu1 %v1269_v48 }
  0x22   :  { %224 = vmatpush.msrb.mxu0 %v1308_v1  ;;  %244 = vmatpush.msrb.mxu1 %v1374_v12 }
  0x23   :  { %937 = vperm.xlu0 %1131, %v935_v50   ;;  %132 = vmatpush.msra.mxu2 %v1597_v51 }
  0x24   :  { %225 = vmatpush.msrb.mxu0 %v1320_v3  ;;  %245 = vmatpush.msrb.mxu1 %v1382_v13 }
  0x25   :  { %217 = vmatpush.msra.mxu3 %v1527_v38  ;;  %133 = vmatpush.msra.mxu2 %v1606_v52 }
  0x26   :  { %226 = vmatpush.msrb.mxu0 %v1330_v5  ;;  %246 = vmatpush.msrb.mxu1 %v1401_v16 }
  0x27   :  { %218 = vmatpush.msra.mxu3 %v1547_v42  ;;  %134 = vmatpush.msra.mxu2 %v1614_v53 }
  0x28   :  { %227 = vmatpush.msrb.mxu0 %v1343_v7  ;;  %247 = vmatpush.msrb.mxu1 %v1420_v20 }
  0x29   :  { %135 = vmatmul.f32.vlgmr.msra.gmra.mxu2 %v1269_v48  ;;  %219 = vmatpush.msra.mxu3 %v1566_v45 }
  0x2a   :  { %228 = vmatpush.msrb.mxu0 %v1356_v9  ;;  %248 = vmatpush.msrb.mxu1 %v1439_v23 }
  0x2b   :  { %328 = vmatpush.msrb.mxu2 %v1303_v0  ;;  %348 = vmatpush.msrb.mxu3 %v1308_v1 }
  0x2c   :  { %229 = vmatpush.msrb.mxu0 %v1369_v11  ;;  %249 = vmatpush.msrb.mxu1 %v1463_v27 }
  0x2d   :  { %329 = vmatpush.msrb.mxu2 %v1313_v2  ;;  %349 = vmatpush.msrb.mxu3 %v1320_v3 }
  0x2e   :  { %230 = vmatpush.msrb.mxu0 %v1392_v15  ;;  %250 = vmatpush.msrb.mxu1 %v1484_v31 }
  0x2f   :  { %330 = vmatpush.msrb.mxu2 %v1325_v4  ;;  %350 = vmatpush.msrb.mxu3 %v1330_v5 }
  0x30   :  { %231 = vmatpush.msrb.mxu0 %v1411_v18  ;;  %251 = vmatpush.msrb.mxu1 %v1502_v34 }
  0x31   :  { %331 = vmatpush.msrb.mxu2 %v1338_v6  ;;  %351 = vmatpush.msrb.mxu3 %v1343_v7 }
  0x32   :  { %232 = vmatpush.msrb.mxu0 %v1430_v22  ;;  %252 = vmatpush.msrb.mxu1 %v1522_v37 }
  0x33   :  { %332 = vmatpush.msrb.mxu2 %v1351_v8  ;;  %352 = vmatpush.msrb.mxu3 %v1356_v9 }
  0x34   :  { %233 = vmatpush.msrb.mxu0 %v1449_v25  ;;  %253 = vmatpush.msrb.mxu1 %v1541_v40 }
  0x35   :  { %333 = vmatpush.msrb.mxu2 %v1364_v10  ;;  %353 = vmatpush.msrb.mxu3 %v1369_v11 }
  0x36   :  { %234 = vmatpush.msrb.mxu0 %v1474_v29  ;;  %254 = vmatpush.msrb.mxu1 %v1561_v44 }
  0x37   :  { %334 = vmatpush.msrb.mxu2 %v1387_v14  ;;  %354 = vmatpush.msrb.mxu3 %v1392_v15 }
  0x38   :  { %235 = vmatpush.msrb.mxu0 %v1494_v33  ;;  %255 = vmatpush.msrb.mxu1 %v1580_v47 }
  0x39   :  { %335 = vmatpush.msrb.mxu2 %v1406_v17  ;;  %355 = vmatpush.msrb.mxu3 %v1411_v18 }
  0x3a   :  { %236 = vmatpush.msrb.mxu0 %v1512_v36  ;;  %256 = vmatpush.msrb.mxu1 %v1589_v49 }
  0x3b   :  { %336 = vmatpush.msrb.mxu2 %v1425_v21  ;;  %356 = vmatpush.msrb.mxu3 %v1430_v22 }
  0x3c   :  { %237 = vmatpush.msrb.mxu0 %v1532_v39  ;;  %257 = vmatpush.msrb.mxu1 %v1597_v51 }
  0x3d   :  { %337 = vmatpush.msrb.mxu2 %v1444_v24  ;;  %357 = vmatpush.msrb.mxu3 %v1449_v25 }
  0x3e   :  { %238 = vmatpush.msrb.mxu0 %v1552_v43  ;;  %258 = vmatpush.msrb.mxu1 %v1606_v52 }
  0x3f   :  { %338 = vmatpush.msrb.mxu2 %v1469_v28  ;;  %358 = vmatpush.msrb.mxu3 %v1474_v29 }
  0x40   :  { %239 = vmatpush.msrb.mxu0 %v1571_v46  ;;  %259 = vmatpush.msrb.mxu1 %v1614_v53 }
  0x41   :  { %339 = vmatpush.msrb.mxu2 %v1489_v32  ;;  %359 = vmatpush.msrb.mxu3 %v1494_v33 }
  0x42   :  { %368 = vmatpush.msra.mxu0 %v1374_v12  ;;  %452 = vmatpush.msra.mxu1 %v1303_v0 }
  0x43   :  { %340 = vmatpush.msrb.mxu2 %v1507_v35  ;;  %360 = vmatpush.msrb.mxu3 %v1512_v36 }
  0x44   :  { %369 = vmatpush.msra.mxu0 %v1382_v13  ;;  %453 = vmatpush.msra.mxu1 %v1313_v2 }
  0x45   :  { %341 = vmatpush.msrb.mxu2 %v1527_v38  ;;  %361 = vmatpush.msrb.mxu3 %v1532_v39 }
  0x46   :  { %370 = vmatpush.msra.mxu0 %v1401_v16  ;;  %454 = vmatpush.msra.mxu1 %v1325_v4 }
  0x47   :  { %342 = vmatpush.msrb.mxu2 %v1547_v42  ;;  %362 = vmatpush.msrb.mxu3 %v1552_v43 }
  0x48   :  { %371 = vmatpush.msra.mxu0 %v1420_v20  ;;  %455 = vmatpush.msra.mxu1 %v1338_v6 }
  0x49   :  { %343 = vmatpush.msrb.mxu2 %v1566_v45  ;;  %363 = vmatpush.msrb.mxu3 %v1571_v46 }
  0x4a   :  { %372 = vmatpush.msra.mxu0 %v1439_v23  ;;  %456 = vmatpush.msra.mxu1 %v1351_v8 }
  0x4b   :  { %472 = vmatpush.msra.mxu2 %v1308_v1 }
  0x4c   :  { %373 = vmatpush.msra.mxu0 %v1463_v27  ;;  %457 = vmatpush.msra.mxu1 %v1364_v10 }
  0x4d   :  { %473 = vmatpush.msra.mxu2 %v1320_v3 }
  0x4e   :  { %374 = vmatpush.msra.mxu0 %v1484_v31  ;;  %458 = vmatpush.msra.mxu1 %v1387_v14 }
  0x4f   :  { %474 = vmatpush.msra.mxu2 %v1330_v5 }
  0x50   :  { %375 = vmatpush.msra.mxu0 %v1502_v34  ;;  %459 = vmatpush.msra.mxu1 %v1406_v17 }
  0x51   :  { %475 = vmatpush.msra.mxu2 %v1343_v7 }
  0x52   :  { %376 = vmatpush.msra.mxu0 %v1522_v37  ;;  %460 = vmatpush.msra.mxu1 %v1425_v21 }
  0x53   :  { %476 = vmatpush.msra.mxu2 %v1356_v9 }
  0x54   :  { %377 = vmatpush.msra.mxu0 %v1541_v40  ;;  %461 = vmatpush.msra.mxu1 %v1444_v24 }
  0x55   :  { %477 = vmatpush.msra.mxu2 %v1369_v11 }
  0x56   :  { %378 = vmatpush.msra.mxu0 %v1561_v44  ;;  %462 = vmatpush.msra.mxu1 %v1469_v28 }
  0x57   :  { %478 = vmatpush.msra.mxu2 %v1392_v15 }
  0x58   :  { %379 = vmatpush.msra.mxu0 %v1580_v47  ;;  %463 = vmatpush.msra.mxu1 %v1489_v32 }
  0x59   :  { %479 = vmatpush.msra.mxu2 %v1411_v18 }
  0x5a   :  { %380 = vmatpush.msra.mxu0 %v1589_v49  ;;  %464 = vmatpush.msra.mxu1 %v1507_v35 }
  0x5b   :  { %480 = vmatpush.msra.mxu2 %v1430_v22 }
  0x5c   :  { %381 = vmatpush.msra.mxu0 %v1597_v51  ;;  %465 = vmatpush.msra.mxu1 %v1527_v38 }
  0x5d   :  { %481 = vmatpush.msra.mxu2 %v1449_v25 }
  0x5e   :  { %382 = vmatpush.msra.mxu0 %v1606_v52  ;;  %466 = vmatpush.msra.mxu1 %v1547_v42 }
  0x5f   :  { %482 = vmatpush.msra.mxu2 %v1474_v29 }
  0x60   :  { %383 = vmatpush.msra.mxu0 %v1614_v53  ;;  %467 = vmatpush.msra.mxu1 %v1566_v45 }
  0x61   :  { %483 = vmatpush.msra.mxu2 %v1494_v33 }
  0x63   :  { %484 = vmatpush.msra.mxu2 %v1512_v36 }
  0x65   :  { %485 = vmatpush.msra.mxu2 %v1532_v39 }
  0x67   :  { %486 = vmatpush.msra.mxu2 %v1552_v43 }
  0x69   :  { %487 = vmatpush.msra.mxu2 %v1571_v46 }
  0x9e   :  { %v96_v56 = vpop.f32.mrf.mxu0  ;;  %v116_v57 = vpop.f32.mrf.mxu1 }
  0x9f   :  { %v139_v58 = vadd.f32 %v96_v56, %v76_v54  ;;  %v159_v59 = vadd.f32 %v116_v57, %v77_v55  ;;  %v1739_v54 = vld [vmem:[%s2325_s3] ss:$0 sm:$0xff] }
  0xa0   :  { %2357 = vst [vmem:[#allocation10_spill] sm:$0xff] %v1739_v54 }
  0xa1   :  { %v1077_v60 = vmul.f32 -1.442695, %v139_v58  ;;  %v1078_v61 = vmul.f32 -1.442695, %v159_v59 }
  0xa3   :  { %1135 = vpow2.f32 %v1077_v60 }
  0xa4   :  { %1137 = vpow2.f32 %v1078_v61 }
  0xa9   :  { %v1136_v62 = vpop.eup %1135 }
  0xaa   :  { %v1138_v63 = vpop.eup %1137  ;;  %v143_v30 = vadd.f32 1.0, %v1136_v62 }
  0xab   :  { %v163_v41 = vadd.f32 1.0, %v1138_v63 }
  0xac   :  { %1139 = vrcp.f32 %v143_v30  ;;  %v136_v56 = vpop.f32.mrf.mxu2  ;;  %v155_v57 = vand.u32 2147483648, %v143_v30  ;;  %v153_v59 = vand.u32 2147483647, %v143_v30  ;;  %vm149_vm4 = vweird.f32 %v143_v30 }
  0xad   :  { %1141 = vrcp.f32 %v163_v41  ;;  %v182_v62 = vadd.f32 %v1739_v54, %v136_v56  ;;  %vm169_vm7 = vweird.f32 %v163_v41  ;;  %v175_v43 = vand.u32 2147483648, %v163_v41 }
  0xae   :  { %v156_v63 = vor.u32 1.1754944e-38, %v155_v57  ;;  %vm154_vm6 = vcmp.eq.f32.partialorder %v153_v59, 8.507059e+37  ;;  %v173_v42 = vand.u32 2147483647, %v163_v41  ;;  %v195_v59 = vpop.permute.xlu0 %194 }
  0xaf   :  { %v176_v56 = vor.u32 1.1754944e-38, %v175_v43  ;;  %vm196_vm11 = vcmp.eq.s32.totalorder %v195_v59, 1  ;;  %v2359_v43 = vld [vmem:[#allocation5_spill] sm:$0xff] }
  0xb0   :  { %vm174_vm10 = vcmp.eq.f32.partialorder %v173_v42, 8.507059e+37  ;;  %v2358_v42 = vld [vmem:[#allocation4_spill] sm:$0xff] }
  0xb2   :  { %v1140_v48 = vpop.eup %1139 }
  0xb3   :  { %v1142_v50 = vpop.eup %1141  ;;  %v145_v19 = vmul.f32 %v1140_v48, %v143_v30  ;;  %vm150_vm3 = vweird.f32 %v1140_v48 }
  0xb4   :  { %v165_v26 = vmul.f32 %v1142_v50, %v163_v41  ;;  %vm151_vm5 = vmor %vm149_vm4, %vm150_vm3  ;;  %vm170_vm8 = vweird.f32 %v1142_v50  ;;  %v2361_v41 = vld [vmem:[#allocation6_spill] sm:$0xff] }
  0xb5   :  { %v146_v46 = vsub.f32 1.0, %v145_v19  ;;  %v78_v19 = vld [vmem:[%s2326_s0 + $0x10] sm:$0xff]  ;;  %vm171_vm9 = vmor %vm169_vm7, %vm170_vm8 }
  0xb6   :  { %v166_v55 = vsub.f32 1.0, %v165_v26 }
  0xb7   :  { %v147_v58 = vmul.f32 %v1140_v48, %v146_v46 }
  0xb8   :  { %v167_v60 = vmul.f32 %v1142_v50, %v166_v55 }
  0xb9   :  { %v148_v61 = vadd.f32 %v1140_v48, %v147_v58 }
  0xba   :  { %v168_v26 = vadd.f32 %v1142_v50, %v167_v60 }
  0xbb   :  { %v152_v45 = vsel %vm151_vm5, %v1140_v48, %v148_v61 }
  0xbc   :  { %v157_v53 = vsel %vm154_vm6, %v156_v63, %v152_v45  ;;  %v172_v30 = vsel %vm171_vm9, %v1142_v50, %v168_v26  ;;  %v2362_v50 = vld [vmem:[#allocation7_spill] sm:$0xff]  ;;  %v1080_v26 = vld [vmem:[%s2326_s0 + $0x18] sm:$0xff] }
  0xbd   :  { %v183_v46 = vmul.f32 %v182_v62, %v157_v53  ;;  %v177_v57 = vsel %vm174_vm10, %v176_v56, %v172_v30  ;;  %v2360_v53 = vld [vmem:[#allocation9_spill] sm:$0xff] }
  0xbe   :  { %v186_v48 = vsub.f32 1.0, %v177_v57  ;;  %v188_v54 = vmul.f32 0.0, %v177_v57 }
  0xbf   :  { %v184_v55 = vadd.f32 %v183_v46, %v78_v19 }
  0xc1   :  { %1143 = vtanh.f32 %v184_v55 }
  0xc7   :  { %v1144_v58 = vpop.eup %1143 }
  0xc8   :  { %v187_v61 = vmul.f32 %v1144_v58, %v186_v48 }
  0xca   :  { %v189_v45 = vadd.f32 %v188_v54, %v187_v61  ;;  %v1081_v54 = vld [vmem:[%s2326_s0 + $0x20] sm:$0xff] }
  0xcb   :  { %v2363_v61 = vld [vmem:[#allocation2_spill] sm:$0xff] }
  0xcc   :  { %v1745_v60 = vsel %vm196_vm11, %v189_v45, 0.0  ;;  %1265 = vmatmul.msk.f32.vlgmr.msra.gmra.mxu3 %vm196_vm11, %v189_v45  ;;  %1266 = vmatmul.msk.f32.vlgmr.msrb.gmra.mxu0 %vm196_vm11, %v189_v45  ;;  %vm1092_vm12 = vcmp.gt.s32.totalorder %v2363_v61, 2  ;;  %vm1099_vm13 = vcmp.gt.s32.totalorder %v2363_v61, 3  ;;  %vm1127_vm1 = vcmp.gt.s32.totalorder %v2363_v61, 7 }
  0xcd   :  { %198 = vst [vmem:[%s2327_s4] sm:$0xff] %v1745_v60  ;;  %1267 = vmatmul.msk.f32.vlgmr.msrb.gmra.mxu1 %vm196_vm11, %v189_v45  ;;  %492 = vmatpush.msra.mxu3 %v1374_v12  ;;  %v2364_v45 = vmov 0  }
  0xce   :  { %576 = vmatpush.msrb.mxu0 %v1303_v0  ;;  %596 = vmatpush.msrb.mxu1 %v1308_v1 }
  0xcf   :  { %493 = vmatpush.msra.mxu3 %v1382_v13 }
  0xd0   :  { %577 = vmatpush.msrb.mxu0 %v1313_v2  ;;  %597 = vmatpush.msrb.mxu1 %v1320_v3 }
  0xd1   :  { %494 = vmatpush.msra.mxu3 %v1401_v16 }
  0xd2   :  { %578 = vmatpush.msrb.mxu0 %v1325_v4  ;;  %598 = vmatpush.msrb.mxu1 %v1330_v5 }
  0xd3   :  { %495 = vmatpush.msra.mxu3 %v1420_v20 }
  0xd4   :  { %579 = vmatpush.msrb.mxu0 %v1338_v6  ;;  %599 = vmatpush.msrb.mxu1 %v1343_v7 }
  0xd5   :  { %496 = vmatpush.msra.mxu3 %v1439_v23 }
  0xd6   :  { %580 = vmatpush.msrb.mxu0 %v1351_v8  ;;  %600 = vmatpush.msrb.mxu1 %v1356_v9 }
  0xd7   :  { %497 = vmatpush.msra.mxu3 %v1463_v27 }
  0xd8   :  { %581 = vmatpush.msrb.mxu0 %v1364_v10  ;;  %601 = vmatpush.msrb.mxu1 %v1369_v11 }
  0xd9   :  { %498 = vmatpush.msra.mxu3 %v1484_v31 }
  0xda   :  { %582 = vmatpush.msrb.mxu0 %v1387_v14  ;;  %602 = vmatpush.msrb.mxu1 %v1392_v15 }
  0xdb   :  { %499 = vmatpush.msra.mxu3 %v1502_v34 }
  0xdc   :  { %583 = vmatpush.msrb.mxu0 %v1406_v17  ;;  %603 = vmatpush.msrb.mxu1 %v1411_v18 }
  0xdd   :  { %500 = vmatpush.msra.mxu3 %v1522_v37 }
  0xde   :  { %584 = vmatpush.msrb.mxu0 %v1425_v21  ;;  %604 = vmatpush.msrb.mxu1 %v1430_v22 }
  0xdf   :  { %501 = vmatpush.msra.mxu3 %v1541_v40 }
  0xe0   :  { %585 = vmatpush.msrb.mxu0 %v1444_v24  ;;  %605 = vmatpush.msrb.mxu1 %v1449_v25 }
  0xe1   :  { %502 = vmatpush.msra.mxu3 %v1561_v44 }
  0xe2   :  { %586 = vmatpush.msrb.mxu0 %v1469_v28  ;;  %606 = vmatpush.msrb.mxu1 %v1474_v29 }
  0xe3   :  { %503 = vmatpush.msra.mxu3 %v1580_v47 }
  0xe4   :  { %587 = vmatpush.msrb.mxu0 %v1489_v32  ;;  %607 = vmatpush.msrb.mxu1 %v1494_v33 }
  0xe5   :  { %504 = vmatpush.msra.mxu3 %v1589_v49 }
  0xe6   :  { %588 = vmatpush.msrb.mxu0 %v1507_v35  ;;  %608 = vmatpush.msrb.mxu1 %v1512_v36 }
  0xe7   :  { %505 = vmatpush.msra.mxu3 %v1597_v51 }
  0xe8   :  { %589 = vmatpush.msrb.mxu0 %v1527_v38  ;;  %609 = vmatpush.msrb.mxu1 %v1532_v39 }
  0xe9   :  { %506 = vmatpush.msra.mxu3 %v1606_v52 }
  0xea   :  { %590 = vmatpush.msrb.mxu0 %v2358_v42  ;;  %610 = vmatpush.msrb.mxu1 %v2359_v43 }
  0xeb   :  { %507 = vmatpush.msra.mxu3 %v2360_v53 }
  0xec   :  { %591 = vmatpush.msrb.mxu0 %v2361_v41  ;;  %611 = vmatpush.msrb.mxu1 %v2362_v50 }
 0x149   :  { %v241_v62 = vpop.f32.mrf.mxu0 }
 0x14a   :  { %v284_v63 = vadd.f32 %v1081_v54, %v241_v62  ;;  %v439_v54 = vsel %vm1092_vm12, 1, %v2364_v45  ;;  %v261_v41 = vpop.f32.mrf.mxu1 }
 0x14b   :  { %441 = vperm.xlu1 %1132, %v439_v54   ;;  %v2365_v54 = vld [vmem:[#allocation10_spill] sm:$0xff] }
 0x14c   :  { %v1084_v19 = vmul.f32 -1.442695, %v284_v63  ;;  %v304_v42 = vadd.f32 %v2365_v54, %v261_v41 }
 0x14e   :  { %1145 = vpow2.f32 %v1084_v19 }
 0x14f   :  { %v221_v46 = vpop.f32.mrf.mxu3 }
 0x150   :  { %v264_v55 = vadd.f32 %v1080_v26, %v221_v46 }
 0x152   :  { %v1083_v30 = vmul.f32 -1.442695, %v264_v55  ;;  %v563_v55 = vsel %vm1099_vm13, 1, %v2364_v45 }
 0x153   :  { %565 = vperm.xlu1 %1132, %v563_v55   ;;  %v1059_v55 = vsel %vm1127_vm1, 1, %v2364_v45 }
 0x154   :  { %v1146_v56 = vpop.eup %1145  ;;  %1147 = vpow2.f32 %v1083_v30 }
 0x155   :  { %v288_v57 = vadd.f32 1.0, %v1146_v56 }
 0x157   :  { %1149 = vrcp.f32 %v288_v57  ;;  %vm294_vm4 = vweird.f32 %v288_v57 }
 0x15a   :  { %v1148_v48 = vpop.eup %1147 }
 0x15b   :  { %v268_v58 = vadd.f32 1.0, %v1148_v48  ;;  %1061 = vperm.xlu1 %1132, %v1059_v55  }
 0x15d   :  { %1151 = vrcp.f32 %v268_v58  ;;  %v1150_v59 = vpop.eup %1149  ;;  %v280_v30 = vand.u32 2147483648, %v268_v58  ;;  %v278_v48 = vand.u32 2147483647, %v268_v58  ;;  %vm274_vm15 = vweird.f32 %v268_v58 }
 0x15e   :  { %v290_v62 = vmul.f32 %v1150_v59, %v288_v57  ;;  %vm295_vm3 = vweird.f32 %v1150_v59 }
 0x15f   :  { %v281_v43 = vor.u32 1.1754944e-38, %v280_v30  ;;  %vm279_vm2 = vcmp.eq.f32.partialorder %v278_v48, 8.507059e+37  ;;  %vm296_vm5 = vmor %vm294_vm4, %vm295_vm3 }
 0x160   :  { %v291_v26 = vsub.f32 1.0, %v290_v62 }
 0x162   :  { %v292_v50 = vmul.f32 %v1150_v59, %v291_v26  ;;  %v300_v26 = vand.u32 2147483648, %v288_v57 }
 0x163   :  { %v1152_v63 = vpop.eup %1151 }
 0x164   :  { %v270_v19 = vmul.f32 %v1152_v63, %v268_v58  ;;  %vm275_vm14 = vweird.f32 %v1152_v63  ;;  %v298_v58 = vand.u32 2147483647, %v288_v57  ;;  %v301_v41 = vor.u32 1.1754944e-38, %v300_v26 }
 0x165   :  { %vm276_vm0 = vmor %vm274_vm15, %vm275_vm14 }
 0x166   :  { %v271_v46 = vsub.f32 1.0, %v270_v19  ;;  %v1082_v19 = vld [vmem:[%s2326_s0 + $0x28] sm:$0xff]  ;;  %vm299_vm6 = vcmp.eq.f32.partialorder %v298_v58, 8.507059e+37 }
 0x168   :  { %v272_v56 = vmul.f32 %v1152_v63, %v271_v46  ;;  %v293_v46 = vadd.f32 %v1150_v59, %v292_v50  ;;  %v318_v50 = vpop.permute.xlu0 %317 }
 0x169   :  { %vm319_vm7 = vcmp.eq.s32.totalorder %v318_v50, 1 }
 0x16a   :  { %v273_v53 = vadd.f32 %v1152_v63, %v272_v56  ;;  %v297_v61 = vsel %vm296_vm5, %v1150_v59, %v293_v46 }
 0x16c   :  { %v277_v52 = vsel %vm276_vm0, %v1152_v63, %v273_v53  ;;  %v302_v53 = vsel %vm299_vm6, %v301_v41, %v297_v61 }
 0x16d   :  { %v282_v62 = vsel %vm279_vm2, %v281_v43, %v277_v52  ;;  %v308_v52 = vsub.f32 1.0, %v302_v53  ;;  %v310_v56 = vmul.f32 %v302_v53, %v1745_v60 }
 0x16e   :  { %v305_v39 = vmul.f32 %v304_v42, %v282_v62 }
 0x170   :  { %v306_v30 = vadd.f32 %v1082_v19, %v305_v39 }
 0x172   :  { %1153 = vtanh.f32 %v306_v30  ;;  %v1089_v30 = vld [vmem:[%s2326_s0 + $0x40] sm:$0xff] }
 0x178   :  { %v1154_v43 = vpop.eup %1153 }
 0x179   :  { %v309_v63 = vmul.f32 %v1154_v43, %v308_v52 }
 0x17b   :  { %v311_v48 = vadd.f32 %v310_v56, %v309_v63 }
 0x17d   :  { %v320_v42 = vsel %vm319_vm7, %v311_v48, 0.0  ;;  %v1817_v62 = vsel %vm319_vm7, %v311_v48, %v1745_v60 }
 0x17e   :  { %1086 = vst [vmem:[%s2327_s4 + $0x8] sm:$0xff] %v320_v42  ;;  %344 = vmatmul.f32.vlgmr.msrb.gmra.mxu2 %v1817_v62  ;;  %364 = vmatmul.f32.vlgmr.msrb.gmra.mxu3 %v1817_v62 }
 0x17f   :  { %384 = vmatmul.f32.vlgmr.msra.gmra.mxu0 %v1817_v62  ;;  %616 = vmatpush.msrb.mxu2 %v1374_v12 }
 0x180   :  { %700 = vmatpush.msrb.mxu3 %v1303_v0  ;;  %720 = vmatpush.msra.mxu0 %v1308_v1  ;;  %v2366_v0 = vld [vmem:[#allocation3_spill] sm:$0xff]  ;;  %v2367_v1 = vld [vmem:[#allocation8_spill] sm:$0xff] }
 0x181   :  { %617 = vmatpush.msrb.mxu2 %v1382_v13 }
 0x182   :  { %701 = vmatpush.msrb.mxu3 %v1313_v2  ;;  %721 = vmatpush.msra.mxu0 %v1320_v3  ;;  %v2368_v2 = vld [vmem:[#allocation4_spill] sm:$0xff]  ;;  %v2369_v3 = vld [vmem:[#allocation5_spill] sm:$0xff] }
 0x183   :  { %618 = vmatpush.msrb.mxu2 %v1401_v16 }
 0x184   :  { %702 = vmatpush.msrb.mxu3 %v1325_v4  ;;  %722 = vmatpush.msra.mxu0 %v1330_v5  ;;  %v2370_v4 = vld [vmem:[#allocation9_spill] sm:$0xff]  ;;  %v2371_v5 = vld [vmem:[#allocation6_spill] sm:$0xff] }
 0x185   :  { %619 = vmatpush.msrb.mxu2 %v1420_v20 }
 0x186   :  { %703 = vmatpush.msrb.mxu3 %v1338_v6  ;;  %723 = vmatpush.msra.mxu0 %v1343_v7  ;;  %v2372_v6 = vld [vmem:[#allocation7_spill] sm:$0xff]  ;;  %v1087_v7 = vld [vmem:[%s2326_s0 + $0x30] sm:$0xff] }
 0x187   :  { %620 = vmatpush.msrb.mxu2 %v1439_v23 }
 0x188   :  { %704 = vmatpush.msrb.mxu3 %v1351_v8  ;;  %724 = vmatpush.msra.mxu0 %v1356_v9  ;;  %v1088_v8 = vld [vmem:[%s2326_s0 + $0x38] sm:$0xff] }
 0x189   :  { %621 = vmatpush.msrb.mxu2 %v1463_v27 }
 0x18a   :  { %705 = vmatpush.msrb.mxu3 %v1364_v10  ;;  %725 = vmatpush.msra.mxu0 %v1369_v11 }
 0x18b   :  { %622 = vmatpush.msrb.mxu2 %v1484_v31 }
 0x18c   :  { %706 = vmatpush.msrb.mxu3 %v1387_v14  ;;  %726 = vmatpush.msra.mxu0 %v1392_v15 }
 0x18d   :  { %623 = vmatpush.msrb.mxu2 %v1502_v34 }
 0x18e   :  { %707 = vmatpush.msrb.mxu3 %v1406_v17  ;;  %727 = vmatpush.msra.mxu0 %v1411_v18 }
 0x18f   :  { %624 = vmatpush.msrb.mxu2 %v1522_v37 }
 0x190   :  { %708 = vmatpush.msrb.mxu3 %v1425_v21  ;;  %728 = vmatpush.msra.mxu0 %v1430_v22 }
 0x191   :  { %625 = vmatpush.msrb.mxu2 %v1541_v40 }
 0x192   :  { %709 = vmatpush.msrb.mxu3 %v1444_v24  ;;  %729 = vmatpush.msra.mxu0 %v1449_v25 }
 0x193   :  { %626 = vmatpush.msrb.mxu2 %v1561_v44 }
 0x194   :  { %710 = vmatpush.msrb.mxu3 %v1469_v28  ;;  %730 = vmatpush.msra.mxu0 %v1474_v29 }
 0x195   :  { %627 = vmatpush.msrb.mxu2 %v1580_v47 }
 0x196   :  { %711 = vmatpush.msrb.mxu3 %v1489_v32  ;;  %731 = vmatpush.msra.mxu0 %v1494_v33 }
 0x197   :  { %628 = vmatpush.msrb.mxu2 %v1589_v49 }
 0x198   :  { %712 = vmatpush.msrb.mxu3 %v1507_v35  ;;  %732 = vmatpush.msra.mxu0 %v1512_v36 }
 0x199   :  { %629 = vmatpush.msrb.mxu2 %v1597_v51 }
 0x19a   :  { %713 = vmatpush.msrb.mxu3 %v1527_v38  ;;  %733 = vmatpush.msra.mxu0 %v2366_v0 }
 0x19b   :  { %630 = vmatpush.msrb.mxu2 %v2367_v1 }
 0x19c   :  { %714 = vmatpush.msrb.mxu3 %v2368_v2  ;;  %734 = vmatpush.msra.mxu0 %v2369_v3 }
 0x19d   :  { %631 = vmatpush.msrb.mxu2 %v2370_v4 }
 0x19e   :  { %715 = vmatpush.msrb.mxu3 %v2371_v5  ;;  %735 = vmatpush.msra.mxu0 %v2372_v6 }
 0x1fc   :  { %v385_v59 = vpop.f32.mrf.mxu0 }
 0x1fd   :  { %v428_v55 = vadd.f32 %v2365_v54, %v385_v59  ;;  %v2022_v59 = vld [vmem:[%s2323_s2 + $0xb0] sm:$0xff] }
 0x201   :  { %v345_v9 = vpop.f32.mrf.mxu2  ;;  %v365_v10 = vpop.f32.mrf.mxu3 }
 0x202   :  { %v388_v11 = vadd.f32 %v1087_v7, %v345_v9  ;;  %v408_v12 = vadd.f32 %v1088_v8, %v365_v10  ;;  %v442_v8 = vpop.permute.xlu1 %441 }
 0x203   :  { %vm443_vm0 = vcmp.eq.s32.totalorder %v442_v8, 1 }
 0x204   :  { %v1090_v13 = vmul.f32 -1.442695, %v388_v11  ;;  %v1091_v14 = vmul.f32 -1.442695, %v408_v12 }
 0x206   :  { %1155 = vpow2.f32 %v1090_v13 }
 0x207   :  { %1157 = vpow2.f32 %v1091_v14  ;;  %v1896_v14 = vld [vmem:[%s2323_s2 + $0x178] sm:$0xff] }
 0x20c   :  { %v1156_v15 = vpop.eup %1155 }
 0x20d   :  { %v1158_v16 = vpop.eup %1157  ;;  %v392_v17 = vadd.f32 1.0, %v1156_v15  ;;  %v1908_v15 = vld [vmem:[%s2323_s2 + $0x170] sm:$0xff] }
 0x20e   :  { %v412_v18 = vadd.f32 1.0, %v1158_v16  ;;  %v1914_v16 = vld [vmem:[%s2323_s2 + $0x160] sm:$0xff] }
 0x20f   :  { %1159 = vrcp.f32 %v392_v17  ;;  %v404_v29 = vand.u32 2147483648, %v392_v17  ;;  %v402_v57 = vand.u32 2147483647, %v392_v17  ;;  %vm398_vm9 = vweird.f32 %v392_v17 }
 0x210   :  { %1161 = vrcp.f32 %v412_v18  ;;  %v424_v53 = vand.u32 2147483648, %v412_v18  ;;  %vm418_vm13 = vweird.f32 %v412_v18  ;;  %v422_v43 = vand.u32 2147483647, %v412_v18 }
 0x211   :  { %v405_v26 = vor.u32 1.1754944e-38, %v404_v29  ;;  %vm403_vm11 = vcmp.eq.f32.partialorder %v402_v57, 8.507059e+37  ;;  %v1970_v29 = vld [vmem:[%s2323_s2 + $0x110] sm:$0xff]  ;;  %v2009_v57 = vld [vmem:[%s2323_s2 + $0xc8] sm:$0xff] }
 0x212   :  { %v425_v50 = vor.u32 1.1754944e-38, %v424_v53  ;;  %vm423_vm15 = vcmp.eq.f32.partialorder %v422_v43, 8.507059e+37 }
 0x215   :  { %v1160_v21 = vpop.eup %1159 }
 0x216   :  { %v1162_v22 = vpop.eup %1161  ;;  %v394_v24 = vmul.f32 %v1160_v21, %v392_v17  ;;  %vm399_vm8 = vweird.f32 %v1160_v21  ;;  %v1920_v17 = vld [vmem:[%s2323_s2 + $0x150] sm:$0xff] }
 0x217   :  { %v414_v25 = vmul.f32 %v1162_v22, %v412_v18  ;;  %vm400_vm10 = vmor %vm398_vm9, %vm399_vm8  ;;  %vm419_vm12 = vweird.f32 %v1162_v22  ;;  %v1926_v18 = vld [vmem:[%s2323_s2 + $0x158] sm:$0xff] }
 0x218   :  { %v395_v28 = vsub.f32 1.0, %v394_v24  ;;  %vm420_vm14 = vmor %vm418_vm13, %vm419_vm12  ;;  %v1944_v24 = vld [vmem:[%s2323_s2 + $0x140] sm:$0xff] }
 0x219   :  { %v415_v39 = vsub.f32 1.0, %v414_v25  ;;  %v1951_v25 = vld [vmem:[%s2323_s2 + $0x120] sm:$0xff] }
 0x21a   :  { %v396_v60 = vmul.f32 %v1160_v21, %v395_v28  ;;  %v1957_v28 = vld [vmem:[%s2323_s2 + $0x128] sm:$0xff] }
 0x21b   :  { %v416_v19 = vmul.f32 %v1162_v22, %v415_v39  ;;  %v1983_v39 = vld [vmem:[%s2323_s2 + $0xf8] sm:$0xff] }
 0x21c   :  { %v397_v46 = vadd.f32 %v1160_v21, %v396_v60  ;;  %v1996_v60 = vld [vmem:[%s2323_s2 + $0xe0] sm:$0xff] }
 0x21d   :  { %v417_v41 = vadd.f32 %v1162_v22, %v416_v19  ;;  %v2035_v19 = vld [vmem:[%s2323_s2 + $0x98] sm:$0xff] }
 0x21e   :  { %v401_v58 = vsel %vm400_vm10, %v1160_v21, %v397_v46  ;;  %v1932_v21 = vld [vmem:[%s2323_s2 + $0x148] sm:$0xff]  ;;  %v2048_v46 = vld [vmem:[%s2323_s2 + $0x80] sm:$0xff] }
 0x21f   :  { %v406_v61 = vsel %vm403_vm11, %v405_v26, %v401_v58  ;;  %v421_v56 = vsel %vm420_vm14, %v1162_v22, %v417_v41  ;;  %v1938_v22 = vld [vmem:[%s2323_s2 + $0x138] sm:$0xff] }
 0x220   :  { %v429_v52 = vmul.f32 %v428_v55, %v406_v61  ;;  %v426_v48 = vsel %vm423_vm15, %v425_v50, %v421_v56 }
 0x221   :  { %v432_v42 = vsub.f32 1.0, %v426_v48  ;;  %v434_v10 = vmul.f32 %v426_v48, %v1817_v62 }
 0x222   :  { %v430_v63 = vadd.f32 %v1089_v30, %v429_v52 }
 0x224   :  { %1163 = vtanh.f32 %v430_v63 }
 0x22a   :  { %v1164_v7 = vpop.eup %1163 }
 0x22b   :  { %v433_v9 = vmul.f32 %v1164_v7, %v432_v42 }
 0x22d   :  { %v435_v11 = vadd.f32 %v434_v10, %v433_v9 }
 0x22f   :  { %v444_v12 = vsel %vm443_vm0, %v435_v11, 0.0  ;;  %v1885_v13 = vsel %vm443_vm0, %v435_v11, %v1817_v62  ;;  %v1902_v62 = vld [vmem:[%s2323_s2 + $0x168] sm:$0xff] }
 0x230   :  { %1093 = vst [vmem:[%s2327_s4 + $0x10] sm:$0xff] %v444_v12  ;;  %468 = vmatmul.f32.vlgmr.msra.gmra.mxu1 %v1885_v13  ;;  %488 = vmatmul.f32.vlgmr.msra.gmra.mxu2 %v1885_v13 }
 0x231   :  { %508 = vmatmul.f32.vlgmr.msra.gmra.mxu3 %v1885_v13  ;;  %740 = vmatpush.msra.mxu1 %v1896_v14 }
 0x232   :  { %824 = vmatpush.msra.mxu2 %v1902_v62  ;;  %844 = vmatpush.msra.mxu3 %v1908_v15 }
 0x233   :  { %741 = vmatpush.msra.mxu1 %v1914_v16 }
 0x234   :  { %825 = vmatpush.msra.mxu2 %v1920_v17  ;;  %845 = vmatpush.msra.mxu3 %v1926_v18 }
 0x235   :  { %742 = vmatpush.msra.mxu1 %v1932_v21 }
 0x236   :  { %826 = vmatpush.msra.mxu2 %v1938_v22  ;;  %846 = vmatpush.msra.mxu3 %v1944_v24 }
 0x237   :  { %743 = vmatpush.msra.mxu1 %v1420_v20  ;;  %v1964_v20 = vld [vmem:[%s2323_s2 + $0x108] sm:$0xff] }
 0x238   :  { %827 = vmatpush.msra.mxu2 %v1951_v25  ;;  %847 = vmatpush.msra.mxu3 %v1957_v28 }
 0x239   :  { %744 = vmatpush.msra.mxu1 %v1439_v23  ;;  %v1977_v23 = vld [vmem:[%s2323_s2 + $0xf0] sm:$0xff] }
 0x23a   :  { %828 = vmatpush.msra.mxu2 %v1964_v20  ;;  %848 = vmatpush.msra.mxu3 %v1970_v29 }
 0x23b   :  { %745 = vmatpush.msra.mxu1 %v1463_v27  ;;  %v1990_v27 = vld [vmem:[%s2323_s2 + $0xd8] sm:$0xff] }
 0x23c   :  { %829 = vmatpush.msra.mxu2 %v1977_v23  ;;  %849 = vmatpush.msra.mxu3 %v1983_v39 }
 0x23d   :  { %746 = vmatpush.msra.mxu1 %v1484_v31  ;;  %v2003_v31 = vld [vmem:[%s2323_s2 + $0xc0] sm:$0xff] }
 0x23e   :  { %830 = vmatpush.msra.mxu2 %v1990_v27  ;;  %850 = vmatpush.msra.mxu3 %v1996_v60 }
 0x23f   :  { %747 = vmatpush.msra.mxu1 %v1502_v34  ;;  %v2016_v34 = vld [vmem:[%s2323_s2 + $0xa8] sm:$0xff] }
 0x240   :  { %831 = vmatpush.msra.mxu2 %v2003_v31  ;;  %851 = vmatpush.msra.mxu3 %v2009_v57 }
 0x241   :  { %748 = vmatpush.msra.mxu1 %v1522_v37  ;;  %v2029_v37 = vld [vmem:[%s2323_s2 + $0x90] sm:$0xff] }
 0x242   :  { %832 = vmatpush.msra.mxu2 %v2016_v34  ;;  %852 = vmatpush.msra.mxu3 %v2022_v59 }
 0x243   :  { %749 = vmatpush.msra.mxu1 %v1541_v40  ;;  %v2042_v40 = vld [vmem:[%s2323_s2 + $0x78] sm:$0xff] }
 0x244   :  { %833 = vmatpush.msra.mxu2 %v2029_v37  ;;  %853 = vmatpush.msra.mxu3 %v2035_v19 }
 0x245   :  { %750 = vmatpush.msra.mxu1 %v1561_v44 }
 0x246   :  { %834 = vmatpush.msra.mxu2 %v2042_v40  ;;  %854 = vmatpush.msra.mxu3 %v2048_v46 }
 0x247   :  { %751 = vmatpush.msra.mxu1 %v1580_v47 }
 0x248   :  { %835 = vmatpush.msra.mxu2 %v1489_v32  ;;  %855 = vmatpush.msra.mxu3 %v1494_v33  ;;  %v1094_v32 = vld [vmem:[%s2326_s0 + $0x48] sm:$0xff] }
 0x249   :  { %752 = vmatpush.msra.mxu1 %v1589_v49 }
 0x24a   :  { %836 = vmatpush.msra.mxu2 %v1507_v35  ;;  %856 = vmatpush.msra.mxu3 %v1512_v36 }
 0x24b   :  { %753 = vmatpush.msra.mxu1 %v1597_v51 }
 0x24c   :  { %837 = vmatpush.msra.mxu2 %v1527_v38  ;;  %857 = vmatpush.msra.mxu3 %v2366_v0  ;;  %v1095_v38 = vld [vmem:[%s2326_s0 + $0x50] sm:$0xff] }
 0x24d   :  { %754 = vmatpush.msra.mxu1 %v2367_v1  ;;  %v1240_v1 = vld [vmem:[%s2324_s1] sm:$0xff] }
 0x24e   :  { %838 = vmatpush.msra.mxu2 %v2368_v2  ;;  %858 = vmatpush.msra.mxu3 %v2369_v3  ;;  %vm1106_vm1 = vcmp.gt.s32.totalorder %v1240_v1, 4  ;;  %vm1113_vm2 = vcmp.gt.s32.totalorder %v1240_v1, 5 }
 0x24f   :  { %755 = vmatpush.msra.mxu1 %v2370_v4  ;;  %v687_v3 = vsel %vm1106_vm1, 1, %v2364_v45  ;;  %v811_v55 = vsel %vm1113_vm2, 1, %v2364_v45  ;;  %v1096_v45 = vld [vmem:[%s2326_s0 + $0x58] sm:$0xff] }
 0x250   :  { %839 = vmatpush.msra.mxu2 %v2371_v5  ;;  %859 = vmatpush.msra.mxu3 %v2372_v6 }
 0x251   :  { %689 = vperm.xlu2 %1133, %v687_v3   ;;  %v1102_v3 = vld [vmem:[%s2326_s0 + $0x68] sm:$0xff] }
 0x259   :  { %813 = vperm.xlu2 %1133, %v811_v55  }
 0x2ad   :  { %v469_v33 = vpop.f32.mrf.mxu1 }
 0x2ae   :  { %v512_v35 = vadd.f32 %v1094_v32, %v469_v33 }
 0x2b0   :  { %v1097_v36 = vmul.f32 -1.442695, %v512_v35 }
 0x2b2   :  { %1165 = vpow2.f32 %v1097_v36 }
 0x2b3   :  { %v489_v44 = vpop.f32.mrf.mxu2 }
 0x2b4   :  { %v532_v47 = vadd.f32 %v1095_v38, %v489_v44  ;;  %v509_v53 = vpop.f32.mrf.mxu3 }
 0x2b5   :  { %v552_v48 = vadd.f32 %v2365_v54, %v509_v53 }
 0x2b6   :  { %v1098_v49 = vmul.f32 -1.442695, %v532_v47 }
 0x2b8   :  { %v1166_v51 = vpop.eup %1165  ;;  %1167 = vpow2.f32 %v1098_v49  ;;  %v566_v49 = vpop.permute.xlu1 %565 }
 0x2b9   :  { %v516_v0 = vadd.f32 1.0, %v1166_v51  ;;  %vm567_vm11 = vcmp.eq.s32.totalorder %v566_v49, 1 }
 0x2bb   :  { %1169 = vrcp.f32 %v516_v0  ;;  %v528_v58 = vand.u32 2147483648, %v516_v0  ;;  %v526_v61 = vand.u32 2147483647, %v516_v0  ;;  %vm522_vm4 = vweird.f32 %v516_v0 }
 0x2bd   :  { %v529_v63 = vor.u32 1.1754944e-38, %v528_v58  ;;  %vm527_vm6 = vcmp.eq.f32.partialorder %v526_v61, 8.507059e+37 }
 0x2be   :  { %v1168_v2 = vpop.eup %1167 }
 0x2bf   :  { %v536_v4 = vadd.f32 1.0, %v1168_v2  ;;  %v1101_v2 = vld [vmem:[%s2326_s0 + $0x60] sm:$0xff] }
 0x2c1   :  { %v1170_v5 = vpop.eup %1169  ;;  %1171 = vrcp.f32 %v536_v4  ;;  %v548_v8 = vand.u32 2147483648, %v536_v4  ;;  %v546_v10 = vand.u32 2147483647, %v536_v4  ;;  %vm542_vm8 = vweird.f32 %v536_v4 }
 0x2c2   :  { %v518_v6 = vmul.f32 %v1170_v5, %v516_v0  ;;  %vm523_vm3 = vweird.f32 %v1170_v5 }
 0x2c3   :  { %vm524_vm5 = vmor %vm522_vm4, %vm523_vm3  ;;  %v549_v32 = vor.u32 1.1754944e-38, %v548_v8  ;;  %vm547_vm10 = vcmp.eq.f32.partialorder %v546_v10, 8.507059e+37 }
 0x2c4   :  { %v519_v26 = vsub.f32 1.0, %v518_v6 }
 0x2c6   :  { %v520_v30 = vmul.f32 %v1170_v5, %v519_v26 }
 0x2c7   :  { %v1172_v41 = vpop.eup %1171 }
 0x2c8   :  { %v538_v52 = vmul.f32 %v1172_v41, %v536_v4  ;;  %v521_v43 = vadd.f32 %v1170_v5, %v520_v30  ;;  %vm543_vm7 = vweird.f32 %v1172_v41 }
 0x2c9   :  { %vm544_vm9 = vmor %vm542_vm8, %vm543_vm7 }
 0x2ca   :  { %v539_v56 = vsub.f32 1.0, %v538_v52  ;;  %v525_v50 = vsel %vm524_vm5, %v1170_v5, %v521_v43 }
 0x2cb   :  { %v530_v42 = vsel %vm527_vm6, %v529_v63, %v525_v50 }
 0x2cc   :  { %v540_v7 = vmul.f32 %v1172_v41, %v539_v56  ;;  %v553_v9 = vmul.f32 %v552_v48, %v530_v42 }
 0x2ce   :  { %v541_v11 = vadd.f32 %v1172_v41, %v540_v7  ;;  %v554_v12 = vadd.f32 %v1096_v45, %v553_v9 }
 0x2d0   :  { %v545_v33 = vsel %vm544_vm9, %v1172_v41, %v541_v11  ;;  %1173 = vtanh.f32 %v554_v12 }
 0x2d1   :  { %v550_v35 = vsel %vm547_vm10, %v549_v32, %v545_v33  ;;  %v1103_v33 = vld [vmem:[%s2326_s0 + $0x70] sm:$0xff] }
 0x2d2   :  { %v556_v36 = vsub.f32 1.0, %v550_v35  ;;  %v558_v47 = vmul.f32 %v550_v35, %v1885_v13 }
 0x2d6   :  { %v1174_v38 = vpop.eup %1173 }
 0x2d7   :  { %v557_v44 = vmul.f32 %v1174_v38, %v556_v36 }
 0x2d9   :  { %v559_v51 = vadd.f32 %v558_v47, %v557_v44 }
 0x2db   :  { %v568_v0 = vsel %vm567_vm11, %v559_v51, 0.0  ;;  %v2083_v1 = vsel %vm567_vm11, %v559_v51, %v1885_v13  ;;  %v2103_v13 = vld [vmem:[%s2323_s2 + $0x130] sm:$0xff] }
 0x2dc   :  { %1100 = vst [vmem:[%s2327_s4 + $0x18] sm:$0xff] %v568_v0  ;;  %592 = vmatmul.f32.vlgmr.msrb.gmra.mxu0 %v2083_v1  ;;  %612 = vmatmul.f32.vlgmr.msrb.gmra.mxu1 %v2083_v1 }
 0x2dd   :  { %632 = vmatmul.f32.vlgmr.msrb.gmra.mxu2 %v2083_v1  ;;  %864 = vmatpush.msrb.mxu0 %v1896_v14 }
 0x2de   :  { %948 = vmatpush.msrb.mxu1 %v1902_v62  ;;  %968 = vmatpush.msrb.mxu2 %v1908_v15  ;;  %v2111_v62 = vld [vmem:[%s2323_s2 + $0x118] sm:$0xff]  ;;  %v2119_v15 = vld [vmem:[%s2323_s2 + $0x100] sm:$0xff] }
 0x2df   :  { %865 = vmatpush.msrb.mxu0 %v1914_v16 }
 0x2e0   :  { %949 = vmatpush.msrb.mxu1 %v1920_v17  ;;  %969 = vmatpush.msrb.mxu2 %v1926_v18  ;;  %v2127_v17 = vld [vmem:[%s2323_s2 + $0xe8] sm:$0xff]  ;;  %v2135_v18 = vld [vmem:[%s2323_s2 + $0xd0] sm:$0xff] }
 0x2e1   :  { %866 = vmatpush.msrb.mxu0 %v1932_v21 }
 0x2e2   :  { %950 = vmatpush.msrb.mxu1 %v1938_v22  ;;  %970 = vmatpush.msrb.mxu2 %v1944_v24  ;;  %v2143_v22 = vld [vmem:[%s2323_s2 + $0xb8] sm:$0xff]  ;;  %v2151_v24 = vld [vmem:[%s2323_s2 + $0xa0] sm:$0xff] }
 0x2e3   :  { %867 = vmatpush.msrb.mxu0 %v2103_v13 }
 0x2e4   :  { %951 = vmatpush.msrb.mxu1 %v1951_v25  ;;  %971 = vmatpush.msrb.mxu2 %v1957_v28  ;;  %v2159_v25 = vld [vmem:[%s2323_s2 + $0x88] sm:$0xff]  ;;  %v2167_v28 = vld [vmem:[%s2323_s2 + $0x70] sm:$0xff] }
 0x2e5   :  { %868 = vmatpush.msrb.mxu0 %v2111_v62 }
 0x2e6   :  { %952 = vmatpush.msrb.mxu1 %v1964_v20  ;;  %972 = vmatpush.msrb.mxu2 %v1970_v29  ;;  %v1250_v20 = vld [vmem:[%s2323_s2 + $0x60] sm:$0xff]  ;;  %v1251_v29 = vld [vmem:[%s2323_s2 + $0x68] sm:$0xff] }
 0x2e7   :  { %869 = vmatpush.msrb.mxu0 %v2119_v15 }
 0x2e8   :  { %953 = vmatpush.msrb.mxu1 %v1977_v23  ;;  %973 = vmatpush.msrb.mxu2 %v1983_v39  ;;  %v2179_v23 = vld [vmem:[%s2323_s2 + $0x58] sm:$0xff]  ;;  %v1253_v39 = vld [vmem:[%s2323_s2 + $0x48] sm:$0xff] }
 0x2e9   :  { %870 = vmatpush.msrb.mxu0 %v2127_v17 }
 0x2ea   :  { %954 = vmatpush.msrb.mxu1 %v1990_v27  ;;  %974 = vmatpush.msrb.mxu2 %v1996_v60  ;;  %v1254_v27 = vld [vmem:[%s2323_s2 + $0x50] sm:$0xff]  ;;  %v2191_v60 = vld [vmem:[%s2323_s2 + $0x40] sm:$0xff] }
 0x2eb   :  { %871 = vmatpush.msrb.mxu0 %v2135_v18 }
 0x2ec   :  { %955 = vmatpush.msrb.mxu1 %v2003_v31  ;;  %975 = vmatpush.msrb.mxu2 %v2009_v57  ;;  %v1256_v31 = vld [vmem:[%s2323_s2 + $0x30] sm:$0xff]  ;;  %v1257_v57 = vld [vmem:[%s2323_s2 + $0x38] sm:$0xff] }
 0x2ed   :  { %872 = vmatpush.msrb.mxu0 %v2143_v22 }
 0x2ee   :  { %956 = vmatpush.msrb.mxu1 %v2016_v34  ;;  %976 = vmatpush.msrb.mxu2 %v2022_v59  ;;  %v2203_v34 = vld [vmem:[%s2323_s2 + $0x28] sm:$0xff]  ;;  %v1259_v59 = vld [vmem:[%s2323_s2 + $0x18] sm:$0xff] }
 0x2ef   :  { %873 = vmatpush.msrb.mxu0 %v2151_v24 }
 0x2f0   :  { %957 = vmatpush.msrb.mxu1 %v2029_v37  ;;  %977 = vmatpush.msrb.mxu2 %v2035_v19  ;;  %v1260_v37 = vld [vmem:[%s2323_s2 + $0x20] sm:$0xff]  ;;  %v2215_v19 = vld [vmem:[%s2323_s2 + $0x10] sm:$0xff] }
 0x2f1   :  { %874 = vmatpush.msrb.mxu0 %v2159_v25 }
 0x2f2   :  { %958 = vmatpush.msrb.mxu1 %v2042_v40  ;;  %978 = vmatpush.msrb.mxu2 %v2048_v46  ;;  %v1262_v40 = vld [vmem:[%s2323_s2] sm:$0xff]  ;;  %v1263_v46 = vld [vmem:[%s2323_s2 + $0x8] sm:$0xff] }
 0x2f3   :  { %875 = vmatpush.msrb.mxu0 %v2167_v28 }
 0x2f4   :  { %959 = vmatpush.msrb.mxu1 %v1250_v20  ;;  %979 = vmatpush.msrb.mxu2 %v1251_v29 }
 0x2f5   :  { %876 = vmatpush.msrb.mxu0 %v2179_v23 }
 0x2f6   :  { %960 = vmatpush.msrb.mxu1 %v1253_v39  ;;  %980 = vmatpush.msrb.mxu2 %v1254_v27  ;;  %v690_v39 = vpop.permute.xlu2 %689 }
 0x2f7   :  { %877 = vmatpush.msrb.mxu0 %v2191_v60  ;;  %vm691_vm4 = vcmp.eq.s32.totalorder %v690_v39, 1 }
 0x2f8   :  { %961 = vmatpush.msrb.mxu1 %v1256_v31  ;;  %981 = vmatpush.msrb.mxu2 %v1257_v57 }
 0x2f9   :  { %878 = vmatpush.msrb.mxu0 %v2203_v34 }
 0x2fa   :  { %962 = vmatpush.msrb.mxu1 %v1259_v59  ;;  %982 = vmatpush.msrb.mxu2 %v1260_v37 }
 0x2fb   :  { %879 = vmatpush.msrb.mxu0 %v2215_v19 }
 0x2fc   :  { %963 = vmatpush.msrb.mxu1 %v1262_v40  ;;  %983 = vmatpush.msrb.mxu2 %v1263_v46 }
 0x359   :  { %v593_v4 = vpop.f32.mrf.mxu0  ;;  %v613_v5 = vpop.f32.mrf.mxu1 }
 0x35a   :  { %v636_v6 = vadd.f32 %v1101_v2, %v593_v4  ;;  %v656_v26 = vadd.f32 %v1102_v3, %v613_v5 }
 0x35c   :  { %v1104_v55 = vmul.f32 -1.442695, %v636_v6  ;;  %v1105_v58 = vmul.f32 -1.442695, %v656_v26 }
 0x35e   :  { %1175 = vpow2.f32 %v1104_v55  ;;  %v2269_v55 = vld [vmem:[%s2325_s3] ss:$0 sm:$0xff] }
 0x35f   :  { %1177 = vpow2.f32 %v1105_v58 }
 0x360   :  { %v633_v8 = vpop.f32.mrf.mxu2 }
 0x361   :  { %v676_v32 = vadd.f32 %v2365_v54, %v633_v8  ;;  %v814_v8 = vpop.permute.xlu2 %813 }
 0x364   :  { %v1176_v30 = vpop.eup %1175 }
 0x365   :  { %v1178_v61 = vpop.eup %1177  ;;  %v640_v41 = vadd.f32 1.0, %v1176_v30 }
 0x366   :  { %v660_v53 = vadd.f32 1.0, %v1178_v61 }
 0x367   :  { %1179 = vrcp.f32 %v640_v41  ;;  %v652_v45 = vand.u32 2147483648, %v640_v41  ;;  %v650_v7 = vand.u32 2147483647, %v640_v41  ;;  %vm646_vm13 = vweird.f32 %v640_v41 }
 0x368   :  { %1181 = vrcp.f32 %v660_v53  ;;  %v672_v44 = vand.u32 2147483648, %v660_v53  ;;  %vm666_vm1 = vweird.f32 %v660_v53  ;;  %v670_v47 = vand.u32 2147483647, %v660_v53 }
 0x369   :  { %v653_v11 = vor.u32 1.1754944e-38, %v652_v45  ;;  %vm651_vm15 = vcmp.eq.f32.partialorder %v650_v7, 8.507059e+37 }
 0x36a   :  { %v673_v0 = vor.u32 1.1754944e-38, %v672_v44  ;;  %vm671_vm3 = vcmp.eq.f32.partialorder %v670_v47, 8.507059e+37 }
 0x36d   :  { %v1180_v52 = vpop.eup %1179 }
 0x36e   :  { %v1182_v43 = vpop.eup %1181  ;;  %v642_v63 = vmul.f32 %v1180_v52, %v640_v41  ;;  %vm647_vm12 = vweird.f32 %v1180_v52  ;;  %v1110_v41 = vld [vmem:[%s2326_s0 + $0x88] sm:$0xff] }
 0x36f   :  { %v662_v56 = vmul.f32 %v1182_v43, %v660_v53  ;;  %vm648_vm14 = vmor %vm646_vm13, %vm647_vm12  ;;  %vm667_vm0 = vweird.f32 %v1182_v43  ;;  %vm815_vm13 = vcmp.eq.s32.totalorder %v814_v8, 1 }
 0x370   :  { %v643_v50 = vsub.f32 1.0, %v642_v63  ;;  %vm668_vm2 = vmor %vm666_vm1, %vm667_vm0 }
 0x371   :  { %v663_v48 = vsub.f32 1.0, %v662_v56 }
 0x372   :  { %v644_v42 = vmul.f32 %v1180_v52, %v643_v50 }
 0x373   :  { %v664_v9 = vmul.f32 %v1182_v43, %v663_v48 }
 0x374   :  { %v645_v10 = vadd.f32 %v1180_v52, %v644_v42 }
 0x375   :  { %v665_v36 = vadd.f32 %v1182_v43, %v664_v9 }
 0x376   :  { %v649_v12 = vsel %vm648_vm14, %v1180_v52, %v645_v10 }
 0x377   :  { %v654_v35 = vsel %vm651_vm15, %v653_v11, %v649_v12  ;;  %v669_v51 = vsel %vm668_vm2, %v1182_v43, %v665_v36 }
 0x378   :  { %v677_v38 = vmul.f32 %v676_v32, %v654_v35  ;;  %v674_v20 = vsel %vm671_vm3, %v673_v0, %v669_v51  ;;  %v1116_v35 = vld [vmem:[%s2326_s0 + $0x98] sm:$0xff] }
 0x379   :  { %v680_v29 = vsub.f32 1.0, %v674_v20  ;;  %v682_v31 = vmul.f32 %v674_v20, %v2083_v1 }
 0x37a   :  { %v678_v49 = vadd.f32 %v1103_v33, %v677_v38  ;;  %v1115_v33 = vld [vmem:[%s2326_s0 + $0x90] sm:$0xff] }
 0x37c   :  { %1183 = vtanh.f32 %v678_v49 }
 0x382   :  { %v1184_v54 = vpop.eup %1183 }
 0x383   :  { %v681_v27 = vmul.f32 %v1184_v54, %v680_v29 }
 0x385   :  { %v683_v57 = vadd.f32 %v682_v31, %v681_v27 }
 0x387   :  { %v692_v59 = vsel %vm691_vm4, %v683_v57, 0.0  ;;  %v2236_v37 = vsel %vm691_vm4, %v683_v57, %v2083_v1 }
 0x388   :  { %1107 = vst [vmem:[%s2327_s4 + $0x20] sm:$0xff] %v692_v59  ;;  %716 = vmatmul.f32.vlgmr.msrb.gmra.mxu3 %v2236_v37  ;;  %736 = vmatmul.f32.vlgmr.msra.gmra.mxu0 %v2236_v37 }
 0x389   :  { %756 = vmatmul.f32.vlgmr.msra.gmra.mxu1 %v2236_v37  ;;  %988 = vmatpush.msrb.mxu3 %v1896_v14  ;;  %v1109_v14 = vld [vmem:[%s2326_s0 + $0x80] sm:$0xff] }
 0x38b   :  { %989 = vmatpush.msrb.mxu3 %v1914_v16 }
 0x38d   :  { %990 = vmatpush.msrb.mxu3 %v1932_v21 }
 0x38f   :  { %991 = vmatpush.msrb.mxu3 %v2103_v13  ;;  %v1108_v13 = vld [vmem:[%s2326_s0 + $0x78] sm:$0xff] }
 0x391   :  { %992 = vmatpush.msrb.mxu3 %v2111_v62 }
 0x393   :  { %993 = vmatpush.msrb.mxu3 %v2119_v15 }
 0x395   :  { %994 = vmatpush.msrb.mxu3 %v2127_v17 }
 0x397   :  { %995 = vmatpush.msrb.mxu3 %v2135_v18 }
 0x399   :  { %996 = vmatpush.msrb.mxu3 %v2143_v22 }
 0x39b   :  { %997 = vmatpush.msrb.mxu3 %v2151_v24 }
 0x39d   :  { %998 = vmatpush.msrb.mxu3 %v2159_v25 }
 0x39f   :  { %999 = vmatpush.msrb.mxu3 %v2167_v28 }
 0x3a1   :  { %1000 = vmatpush.msrb.mxu3 %v2179_v23 }
 0x3a3   :  { %1001 = vmatpush.msrb.mxu3 %v2191_v60 }
 0x3a5   :  { %1002 = vmatpush.msrb.mxu3 %v2203_v34 }
 0x3a7   :  { %1003 = vmatpush.msrb.mxu3 %v2215_v19 }
 0x405   :  { %v737_v16 = vpop.f32.mrf.mxu0 }
 0x406   :  { %v780_v21 = vadd.f32 %v1109_v14, %v737_v16  ;;  %v757_v5 = vpop.f32.mrf.mxu1 }
 0x407   :  { %v800_v58 = vadd.f32 %v2269_v55, %v757_v5 }
 0x408   :  { %v1112_v1 = vmul.f32 -1.442695, %v780_v21 }
 0x40a   :  { %1185 = vpow2.f32 %v1112_v1 }
 0x40b   :  { %v717_v62 = vpop.f32.mrf.mxu3 }
 0x40c   :  { %v760_v15 = vadd.f32 %v1108_v13, %v717_v62 }
 0x40e   :  { %v1111_v17 = vmul.f32 -1.442695, %v760_v15 }
 0x410   :  { %v1186_v18 = vpop.eup %1185  ;;  %1187 = vpow2.f32 %v1111_v17 }
 0x411   :  { %v784_v22 = vadd.f32 1.0, %v1186_v18 }
 0x413   :  { %1189 = vrcp.f32 %v784_v22  ;;  %v796_v52 = vand.u32 2147483648, %v784_v22  ;;  %vm790_vm10 = vweird.f32 %v784_v22  ;;  %v794_v63 = vand.u32 2147483647, %v784_v22 }
 0x415   :  { %v797_v48 = vor.u32 1.1754944e-38, %v796_v52  ;;  %vm795_vm12 = vcmp.eq.f32.partialorder %v794_v63, 8.507059e+37 }
 0x416   :  { %v1188_v24 = vpop.eup %1187 }
 0x417   :  { %v764_v25 = vadd.f32 1.0, %v1188_v24  ;;  %v1117_v24 = vld [vmem:[%s2326_s0 + $0xa0] sm:$0xff] }
 0x419   :  { %1191 = vrcp.f32 %v764_v25  ;;  %v1190_v28 = vpop.eup %1189  ;;  %v776_v46 = vand.u32 2147483648, %v764_v25  ;;  %v774_v3 = vand.u32 2147483647, %v764_v25  ;;  %vm770_vm6 = vweird.f32 %v764_v25 }
 0x41a   :  { %v786_v23 = vmul.f32 %v1190_v28, %v784_v22  ;;  %vm791_vm9 = vweird.f32 %v1190_v28 }
 0x41b   :  { %v777_v26 = vor.u32 1.1754944e-38, %v776_v46  ;;  %vm775_vm8 = vcmp.eq.f32.partialorder %v774_v3, 8.507059e+37  ;;  %vm792_vm11 = vmor %vm790_vm10, %vm791_vm9 }
 0x41c   :  { %v787_v19 = vsub.f32 1.0, %v786_v23 }
 0x41e   :  { %v788_v4 = vmul.f32 %v1190_v28, %v787_v19 }
 0x41f   :  { %v1192_v60 = vpop.eup %1191 }
 0x420   :  { %v766_v34 = vmul.f32 %v1192_v60, %v764_v25  ;;  %vm771_vm5 = vweird.f32 %v1192_v60  ;;  %v789_v53 = vadd.f32 %v1190_v28, %v788_v4  ;;  %v938_v4 = vpop.permute.xlu0 %937 }
 0x421   :  { %vm772_vm7 = vmor %vm770_vm6, %vm771_vm5  ;;  %vm939_vm6 = vcmp.eq.s32.totalorder %v938_v4, 1 }
 0x422   :  { %v767_v40 = vsub.f32 1.0, %v766_v34  ;;  %v793_v50 = vsel %vm792_vm11, %v1190_v28, %v789_v53 }
 0x423   :  { %v798_v45 = vsel %vm795_vm12, %v797_v48, %v793_v50 }
 0x424   :  { %v768_v2 = vmul.f32 %v1192_v60, %v767_v40  ;;  %v804_v42 = vsub.f32 1.0, %v798_v45  ;;  %v806_v10 = vmul.f32 %v798_v45, %v2236_v37 }
 0x426   :  { %v769_v6 = vadd.f32 %v1192_v60, %v768_v2 }
 0x428   :  { %v773_v30 = vsel %vm772_vm7, %v1192_v60, %v769_v6 }
 0x429   :  { %v778_v61 = vsel %vm775_vm8, %v777_v26, %v773_v30 }
 0x42a   :  { %v801_v43 = vmul.f32 %v800_v58, %v778_v61  ;;  %v1122_v61 = vld [vmem:[%s2326_s0 + $0xa8] sm:$0xff] }
 0x42c   :  { %v802_v56 = vadd.f32 %v1110_v41, %v801_v43  ;;  %v1123_v43 = vld [vmem:[%s2326_s0 + $0xb0] sm:$0xff] }
 0x42e   :  { %1193 = vtanh.f32 %v802_v56 }
 0x434   :  { %v1194_v7 = vpop.eup %1193 }
 0x435   :  { %v805_v9 = vmul.f32 %v1194_v7, %v804_v42 }
 0x437   :  { %v807_v11 = vadd.f32 %v806_v10, %v805_v9 }
 0x439   :  { %v816_v12 = vsel %vm815_vm13, %v807_v11, 0.0  ;;  %v2277_v32 = vsel %vm815_vm13, %v807_v11, %v2236_v37 }
 0x43a   :  { %1114 = vst [vmem:[%s2327_s4 + $0x28] sm:$0xff] %v816_v12  ;;  %840 = vmatmul.f32.vlgmr.msra.gmra.mxu2 %v2277_v32  ;;  %860 = vmatmul.f32.vlgmr.msra.gmra.mxu3 %v2277_v32 }
 0x43b   :  { %880 = vmatmul.f32.vlgmr.msrb.gmra.mxu0 %v2277_v32 }
 0x4b8   :  { %v881_v1 = vpop.f32.mrf.mxu0 }
 0x4b9   :  { %v924_v17 = vadd.f32 %v2269_v55, %v881_v1 }
 0x4bd   :  { %v841_v36 = vpop.f32.mrf.mxu2  ;;  %v861_v38 = vpop.f32.mrf.mxu3 }
 0x4be   :  { %v884_v44 = vadd.f32 %v1115_v33, %v841_v36  ;;  %v904_v47 = vadd.f32 %v1116_v35, %v861_v38 }
 0x4c0   :  { %v1118_v49 = vmul.f32 -1.442695, %v884_v44  ;;  %v1119_v51 = vmul.f32 -1.442695, %v904_v47 }
 0x4c2   :  { %1195 = vpow2.f32 %v1118_v49 }
 0x4c3   :  { %1197 = vpow2.f32 %v1119_v51 }
 0x4c8   :  { %v1196_v0 = vpop.eup %1195 }
 0x4c9   :  { %v1198_v20 = vpop.eup %1197  ;;  %v888_v29 = vadd.f32 1.0, %v1196_v0  ;;  %v1124_v0 = vld [vmem:[%s2326_s0 + $0xb8] sm:$0xff] }
 0x4ca   :  { %v908_v54 = vadd.f32 1.0, %v1198_v20 }
 0x4cb   :  { %1199 = vrcp.f32 %v888_v29  ;;  %v900_v37 = vand.u32 2147483648, %v888_v29  ;;  %v898_v21 = vand.u32 2147483647, %v888_v29  ;;  %vm894_vm15 = vweird.f32 %v888_v29 }
 0x4cc   :  { %1201 = vrcp.f32 %v908_v54  ;;  %v920_v23 = vand.u32 2147483648, %v908_v54  ;;  %vm914_vm3 = vweird.f32 %v908_v54  ;;  %v918_v60 = vand.u32 2147483647, %v908_v54 }
 0x4cd   :  { %v901_v15 = vor.u32 1.1754944e-38, %v900_v37  ;;  %vm899_vm1 = vcmp.eq.f32.partialorder %v898_v21, 8.507059e+37  ;;  %v1062_v21 = vpop.permute.xlu1 %1061 }
 0x4ce   :  { %v921_v40 = vor.u32 1.1754944e-38, %v920_v23  ;;  %vm919_vm5 = vcmp.eq.f32.partialorder %v918_v60, 8.507059e+37 }
 0x4d1   :  { %v1200_v39 = vpop.eup %1199 }
 0x4d2   :  { %v1202_v27 = vpop.eup %1201  ;;  %v890_v31 = vmul.f32 %v1200_v39, %v888_v29  ;;  %vm895_vm14 = vweird.f32 %v1200_v39 }
 0x4d3   :  { %v910_v57 = vmul.f32 %v1202_v27, %v908_v54  ;;  %vm896_vm0 = vmor %vm894_vm15, %vm895_vm14  ;;  %vm915_vm2 = vweird.f32 %v1202_v27  ;;  %vm1063_vm15 = vcmp.eq.s32.totalorder %v1062_v21, 1 }
 0x4d4   :  { %v891_v59 = vsub.f32 1.0, %v890_v31  ;;  %vm916_vm4 = vmor %vm914_vm3, %vm915_vm2 }
 0x4d5   :  { %v911_v14 = vsub.f32 1.0, %v910_v57 }
 0x4d6   :  { %v892_v16 = vmul.f32 %v1200_v39, %v891_v59 }
 0x4d7   :  { %v912_v13 = vmul.f32 %v1202_v27, %v911_v14 }
 0x4d8   :  { %v893_v62 = vadd.f32 %v1200_v39, %v892_v16 }
 0x4d9   :  { %v913_v25 = vadd.f32 %v1202_v27, %v912_v13 }
 0x4da   :  { %v897_v18 = vsel %vm896_vm0, %v1200_v39, %v893_v62 }
 0x4db   :  { %v902_v22 = vsel %vm899_vm1, %v901_v15, %v897_v18  ;;  %v917_v19 = vsel %vm916_vm4, %v1202_v27, %v913_v25 }
 0x4dc   :  { %v925_v28 = vmul.f32 %v924_v17, %v902_v22  ;;  %v922_v46 = vsel %vm919_vm5, %v921_v40, %v917_v19 }
 0x4dd   :  { %v928_v2 = vsub.f32 1.0, %v922_v46  ;;  %v930_v6 = vmul.f32 %v922_v46, %v2277_v32 }
 0x4de   :  { %v926_v34 = vadd.f32 %v1117_v24, %v925_v28 }
 0x4e0   :  { %1203 = vtanh.f32 %v926_v34 }
 0x4e6   :  { %v1204_v3 = vpop.eup %1203 }
 0x4e7   :  { %v929_v5 = vmul.f32 %v1204_v3, %v928_v2 }
 0x4e9   :  { %v931_v26 = vadd.f32 %v930_v6, %v929_v5 }
 0x4eb   :  { %v940_v58 = vsel %vm939_vm6, %v931_v26, 0.0  ;;  %v2297_v30 = vsel %vm939_vm6, %v931_v26, %v2277_v32 }
 0x4ec   :  { %1121 = vst [vmem:[%s2327_s4 + $0x30] sm:$0xff] %v940_v58  ;;  %964 = vmatmul.f32.vlgmr.msrb.gmra.mxu1 %v2297_v30  ;;  %984 = vmatmul.f32.vlgmr.msrb.gmra.mxu2 %v2297_v30 }
 0x4ed   :  { %1004 = vmatmul.f32.vlgmr.msrb.gmra.mxu3 %v2297_v30 }
 0x569   :  { %v965_v41 = vpop.f32.mrf.mxu1 }
 0x56a   :  { %v1008_v53 = vadd.f32 %v1122_v61, %v965_v41 }
 0x56c   :  { %v1125_v52 = vmul.f32 -1.442695, %v1008_v53 }
 0x56e   :  { %1205 = vpow2.f32 %v1125_v52 }
 0x56f   :  { %v985_v63 = vpop.f32.mrf.mxu2 }
 0x570   :  { %v1028_v56 = vadd.f32 %v1123_v43, %v985_v63  ;;  %v1005_v35 = vpop.f32.mrf.mxu3 }
 0x571   :  { %v1048_v51 = vadd.f32 %v2269_v55, %v1005_v35 }
 0x572   :  { %v1126_v50 = vmul.f32 -1.442695, %v1028_v56 }
 0x574   :  { %v1206_v48 = vpop.eup %1205  ;;  %1207 = vpow2.f32 %v1126_v50 }
 0x575   :  { %v1012_v45 = vadd.f32 1.0, %v1206_v48 }
 0x577   :  { %1209 = vrcp.f32 %v1012_v45  ;;  %v1024_v11 = vand.u32 2147483648, %v1012_v45  ;;  %v1022_v32 = vand.u32 2147483647, %v1012_v45  ;;  %vm1018_vm8 = vweird.f32 %v1012_v45 }
 0x579   :  { %v1025_v44 = vor.u32 1.1754944e-38, %v1024_v11  ;;  %vm1023_vm10 = vcmp.eq.f32.partialorder %v1022_v32, 8.507059e+37 }
 0x57a   :  { %v1208_v42 = vpop.eup %1207 }
 0x57b   :  { %v1032_v7 = vadd.f32 1.0, %v1208_v42 }
 0x57d   :  { %v1210_v8 = vpop.eup %1209  ;;  %1211 = vrcp.f32 %v1032_v7  ;;  %v1044_v54 = vand.u32 2147483648, %v1032_v7  ;;  %v1042_v27 = vand.u32 2147483647, %v1032_v7  ;;  %vm1038_vm12 = vweird.f32 %v1032_v7 }
 0x57e   :  { %v1014_v9 = vmul.f32 %v1210_v8, %v1012_v45  ;;  %vm1019_vm7 = vweird.f32 %v1210_v8 }
 0x57f   :  { %vm1020_vm9 = vmor %vm1018_vm8, %vm1019_vm7  ;;  %v1045_v59 = vor.u32 1.1754944e-38, %v1044_v54  ;;  %vm1043_vm14 = vcmp.eq.f32.partialorder %v1042_v27, 8.507059e+37 }
 0x580   :  { %v1015_v10 = vsub.f32 1.0, %v1014_v9 }
 0x582   :  { %v1016_v12 = vmul.f32 %v1210_v8, %v1015_v10 }
 0x583   :  { %v1212_v33 = vpop.eup %1211 }
 0x584   :  { %v1034_v36 = vmul.f32 %v1212_v33, %v1032_v7  ;;  %v1017_v38 = vadd.f32 %v1210_v8, %v1016_v12  ;;  %vm1039_vm11 = vweird.f32 %v1212_v33 }
 0x585   :  { %vm1040_vm13 = vmor %vm1038_vm12, %vm1039_vm11 }
 0x586   :  { %v1035_v47 = vsub.f32 1.0, %v1034_v36  ;;  %v1021_v49 = vsel %vm1020_vm9, %v1210_v8, %v1017_v38 }
 0x587   :  { %v1026_v20 = vsel %vm1023_vm10, %v1025_v44, %v1021_v49 }
 0x588   :  { %v1036_v29 = vmul.f32 %v1212_v33, %v1035_v47  ;;  %v1049_v39 = vmul.f32 %v1048_v51, %v1026_v20 }
 0x58a   :  { %v1037_v31 = vadd.f32 %v1212_v33, %v1036_v29  ;;  %v1050_v57 = vadd.f32 %v1124_v0, %v1049_v39 }
 0x58c   :  { %v1041_v37 = vsel %vm1040_vm13, %v1212_v33, %v1037_v31  ;;  %1213 = vtanh.f32 %v1050_v57 }
 0x58d   :  { %v1046_v14 = vsel %vm1043_vm14, %v1045_v59, %v1041_v37 }
 0x58e   :  { %v1052_v55 = vsub.f32 1.0, %v1046_v14  ;;  %v1054_v13 = vmul.f32 %v1046_v14, %v2297_v30 }
 0x592   :  { %v1214_v16 = vpop.eup %1213 }
 0x593   :  { %v1053_v1 = vmul.f32 %v1214_v16, %v1052_v55 }
 0x595   :  { %v1055_v62 = vadd.f32 %v1054_v13, %v1053_v1 }
 0x597   :  { %v1064_v15 = vsel %vm1063_vm15, %v1055_v62, 0.0  ;;  %v1067_v17 = vsel %vm1063_vm15, %v1055_v62, %v2297_v30 }
 0x598   :  { %1128 = vst [vmem:[%s2327_s4 + $0x38] sm:$0xff] %v1064_v15 }
 0x599   :  { %1068 = vst [vmem:[%s2328_s5] sm:$0xff] %v1067_v17 }

</bundles_post_ra>
